<compile_context>
chip_gen: v5e
topology: v5e:2x2
jax: 0.10.0
libtpu: 0.0.40
codegen_flags: <defaults>
</compile_context>

<pallas_src>
import functools

import jax
import jax.numpy as jnp
from jax.experimental import pallas as pl
from jax.experimental.pallas import tpu as pltpu


# ----------------------------- helpers --------------------------------------

def _full_spec(shape, memory_space=None):
    nd = len(shape)
    idx = lambda i, _nd=nd: (0,) * _nd
    if memory_space is None:
        return pl.BlockSpec(shape, idx)
    return pl.BlockSpec(shape, idx, memory_space=memory_space)


def _layer_norm(v, alpha, bias, d, eps):
    # torch.Tensor.std is UNBIASED (ddof=1); reference adds eps to std.
    mean = jnp.mean(v, axis=-1, keepdims=True)
    c = v - mean
    var = jnp.sum(c * c, axis=-1, keepdims=True) * (1.0 / (d - 1))
    inv = pl.reciprocal(jnp.sqrt(var) + eps, approx=True)
    return alpha * c * inv + bias


# ----------------------------- Pallas kernels -------------------------------

def _decoder_block_kernel(ln_ref, x_ref, enc_ref, tgtb_ref, srcb_ref,
                          sa_wqkv_ref, sa_bqkv_ref, sa_wo_ref, sa_bo_ref,
                          ca_wq_ref, ca_bq_ref, ca_wkv_ref, ca_bkv_ref,
                          ca_wo_ref, ca_bo_ref,
                          ff_w1_ref, ff_b1_ref, ff_w2_ref, ff_b2_ref,
                          o_ref, *, num_heads, eps):
    B, Sq, D = x_ref.shape
    Skv = enc_ref.shape[1]
    H = num_heads
    dk = D // H
    scale = 1.0 / (dk ** 0.5)

    x2 = x_ref[...].astype(jnp.float32).reshape(B * Sq, D)        # (M, D)
    enc2 = enc_ref[...].astype(jnp.float32).reshape(B * Skv, D)   # (Mk, D)
    tgt_bias = tgtb_ref[...].astype(jnp.float32)                  # (B, Sq, Sq)
    src_bias = srcb_ref[...].astype(jnp.float32)                  # (B, Sq, Skv)

    def mha(q_mat, q_off, kv_mat, k_off, v_off, s_len, bias, wo_ref, bo_ref):
        """All-heads masked attention; heads folded into the Wo projection."""
        acc = None
        for h in range(H):                      # static, fully unrolled (H=4)
            qh = q_mat[:, q_off + h * dk: q_off + (h + 1) * dk]
            kh = kv_mat[:, k_off + h * dk: k_off + (h + 1) * dk]
            vh = kv_mat[:, v_off + h * dk: v_off + (h + 1) * dk]
            qh = qh.reshape(B, Sq, dk)
            kh = kh.reshape(B, s_len, dk)
            vh = vh.reshape(B, s_len, dk)
            s = jnp.einsum("bqd,bkd->bqk", qh, kh,
                           preferred_element_type=jnp.float32) * scale
            s = s + bias                        # additive mask (0 / -1e9)
            s = s - jnp.max(s, axis=-1, keepdims=True)
            p = jnp.exp(s)
            p = p * pl.reciprocal(jnp.sum(p, axis=-1, keepdims=True),
                                  approx=True)
            oh = jnp.einsum("bqk,bkd->bqd", p, vh,
                            preferred_element_type=jnp.float32)   # (B,Sq,dk)
            contrib = jnp.dot(oh.reshape(B * Sq, dk),
                              wo_ref[h * dk:(h + 1) * dk, :],
                              preferred_element_type=jnp.float32)  # (M, D)
            acc = contrib if acc is None else acc + contrib
        return acc + bo_ref[...]

    # ---- residual 0: pre-norm self-attention (fused QKV, lane-dense N=3D)
    h1 = _layer_norm(x2, ln_ref[0], ln_ref[1], D, eps)
    qkv = (jnp.dot(h1, sa_wqkv_ref[...], preferred_element_type=jnp.float32)
           + sa_bqkv_ref[...])                                     # (M, 3D)
    x2 = x2 + mha(qkv, 0, qkv, D, 2 * D, Sq, tgt_bias, sa_wo_ref, sa_bo_ref)

    # ---- residual 1: pre-norm cross-attention (encoder output un-normed)
    h2 = _layer_norm(x2, ln_ref[2], ln_ref[3], D, eps)
    q_all = (jnp.dot(h2, ca_wq_ref[...], preferred_element_type=jnp.float32)
             + ca_bq_ref[...])                                     # (M, D)
    kv_all = (jnp.dot(enc2, ca_wkv_ref[...], preferred_element_type=jnp.float32)
              + ca_bkv_ref[...])                                   # (Mk, 2D)
    x2 = x2 + mha(q_all, 0, kv_all, 0, D, Skv, src_bias, ca_wo_ref, ca_bo_ref)

    # ---- residual 2: pre-norm feed-forward (ReLU)
    h3 = _layer_norm(x2, ln_ref[4], ln_ref[5], D, eps)
    f = jnp.dot(h3, ff_w1_ref[...], preferred_element_type=jnp.float32)
    f = jnp.maximum(f + ff_b1_ref[...], 0.0)
    f = jnp.dot(f, ff_w2_ref[...], preferred_element_type=jnp.float32)
    x2 = x2 + f + ff_b2_ref[...]

    o_ref[...] = x2.reshape(B, Sq, D).astype(o_ref.dtype)


def _final_norm_kernel(ab_ref, x_ref, o_ref, *, eps):
    x = x_ref[...].astype(jnp.float32)
    y = _layer_norm(x, ab_ref[0], ab_ref[1], x.shape[-1], eps)
    o_ref[...] = y.astype(o_ref.dtype)


# ----------------------------- wrappers --------------------------------------

def decoder_block(p, x, enc, tgt_bias, src_bias, num_heads):
    B, Sq, D = x.shape
    Skv = enc.shape[1]
    F = p["ff_w1"].shape[1]
    kernel = functools.partial(_decoder_block_kernel,
                               num_heads=num_heads, eps=1e-6)
    return pl.pallas_call(
        kernel,
        out_shape=jax.ShapeDtypeStruct((B, Sq, D), x.dtype),
        grid=(1,),
        in_specs=[
            _full_spec((6,), pltpu.MemorySpace.SMEM),   # packed LN alpha/bias
            _full_spec((B, Sq, D)),
            _full_spec((B, Skv, D)),
            _full_spec((B, Sq, Sq)),
            _full_spec((B, Sq, Skv)),
            _full_spec((D, 3 * D)), _full_spec((1, 3 * D)),
            _full_spec((D, D)), _full_spec((1, D)),
            _full_spec((D, D)), _full_spec((1, D)),
            _full_spec((D, 2 * D)), _full_spec((1, 2 * D)),
            _full_spec((D, D)), _full_spec((1, D)),
            _full_spec((D, F)), _full_spec((1, F)),
            _full_spec((F, D)), _full_spec((1, D)),
        ],
        out_specs=_full_spec((B, Sq, D)),
        compiler_params=pltpu.CompilerParams(
            dimension_semantics=("arbitrary",)),
    )(p["ln"], x, enc, tgt_bias, src_bias,
      p["sa_wqkv"], p["sa_bqkv"], p["sa_wo"], p["sa_bo"],
      p["ca_wq"], p["ca_bq"], p["ca_wkv"], p["ca_bkv"], p["ca_wo"], p["ca_bo"],
      p["ff_w1"], p["ff_b1"], p["ff_w2"], p["ff_b2"])


def final_layer_norm(x, ab, eps=1e-6):
    B, S, D = x.shape
    out = pl.pallas_call(
        functools.partial(_final_norm_kernel, eps=eps),
        out_shape=jax.ShapeDtypeStruct((B * S, D), x.dtype),
        grid=(1,),
        in_specs=[_full_spec((2,), pltpu.MemorySpace.SMEM),
                  _full_spec((B * S, D))],
        out_specs=_full_spec((B * S, D)),
    )(ab, x.reshape(B * S, D))
    return out.reshape(B, S, D)


def decoder_forward(params, x, encoder_output, src_mask, target_mask, num_heads):
    # masks (1 = keep, 0 = mask) -> additive biases, computed once outside.
    tgt_bias = (1.0 - target_mask[:, 0]) * jnp.float32(-1e9)   # (B, Sq, Sq)
    src_bias = (1.0 - src_mask[:, 0]) * jnp.float32(-1e9)      # (B, Sq, Skv)

    # Pad encoder length to a sublane multiple (8); padded keys fully masked.
    Skv = encoder_output.shape[1]
    pad = (-Skv) % 8
    if pad:
        encoder_output = jnp.pad(encoder_output, ((0, 0), (0, pad), (0, 0)))
        src_bias = jnp.pad(src_bias, ((0, 0), (0, 0), (0, pad)),
                           constant_values=-1e9)

    for lp in params["layers"]:
        x = decoder_block(lp, x, encoder_output, tgt_bias, src_bias, num_heads)
    return final_layer_norm(x, params["norm_ab"])


# ----------------------------- param init ------------------------------------

def init_params(key, num_layers, d_model, d_ff):
    def dense(k, fan_in, fan_out):
        kw, kb = jax.random.split(k)
        w = jax.random.normal(kw, (fan_in, fan_out), jnp.float32) * 0.02
        b = jax.random.normal(kb, (1, fan_out), jnp.float32) * 0.02
        return w, b

    ln_pack = jnp.array([1.0, 0.0, 1.0, 0.0, 1.0, 0.0], jnp.float32)
    layers = []
    keys = jax.random.split(key, num_layers)
    for i in range(num_layers):
        ks = jax.random.split(keys[i], 10)
        wq, bq = dense(ks[0], d_model, d_model)
        wk, bk = dense(ks[1], d_model, d_model)
        wv, bv = dense(ks[2], d_model, d_model)
        wo, bo = dense(ks[3], d_model, d_model)
        cwq, cbq = dense(ks[4], d_model, d_model)
        cwk, cbk = dense(ks[5], d_model, d_model)
        cwv, cbv = dense(ks[6], d_model, d_model)
        cwo, cbo = dense(ks[7], d_model, d_model)
        w1, b1 = dense(ks[8], d_model, d_ff)
        w2, b2 = dense(ks[9], d_ff, d_model)
        layers.append(dict(
            ln=ln_pack,
            sa_wqkv=jnp.concatenate([wq, wk, wv], axis=1),
            sa_bqkv=jnp.concatenate([bq, bk, bv], axis=1),
            sa_wo=wo, sa_bo=bo,
            ca_wq=cwq, ca_bq=cbq,
            ca_wkv=jnp.concatenate([cwk, cwv], axis=1),
            ca_bkv=jnp.concatenate([cbk, cbv], axis=1),
            ca_wo=cwo, ca_bo=cbo,
            ff_w1=w1, ff_b1=b1, ff_w2=w2, ff_b2=b2,
        ))
    return dict(layers=layers, norm_ab=jnp.array([1.0, 0.0], jnp.float32))


# ----------------------------- main -------------------------------------------

if __name__ == "__main__":
    B, S_tgt, S_src = 2, 8, 12
    d_model, num_heads, d_ff, num_layers = 64, 4, 128, 2

    root = jax.random.PRNGKey(0)
    k_params, k_x, k_enc = jax.random.split(root, 3)

    params = init_params(k_params, num_layers, d_model, d_ff)
    x = jax.random.normal(k_x, (B, S_tgt, d_model), jnp.float32)
    encoder_output = jax.random.normal(k_enc, (B, S_src, d_model), jnp.float32)

    # target mask: causal; src mask: all-ones (no source padding).
    tgt = jnp.tril(jnp.ones((S_tgt, S_tgt), jnp.float32))
    target_mask = jnp.broadcast_to(tgt[None, None], (B, 1, S_tgt, S_tgt))
    src_mask = jnp.ones((B, 1, S_tgt, S_src), jnp.float32)

    fwd = jax.jit(decoder_forward, static_argnames=("num_heads",))
    out = fwd(params, x, encoder_output, src_mask, target_mask,
              num_heads=num_heads)
    out = jax.block_until_ready(out)
    assert out.shape == (B, S_tgt, d_model)
    print("KERNEL_OK")
</pallas_src>

<mosaic_0001>
module attributes {stable_mosaic.version = 11 : i64} {
  func.func @_final_norm_kernel(%arg0: i32, %arg1: memref<2xf32, #tpu.memory_space<smem>>, %arg2: memref<16x64xf32, #tpu.memory_space<vmem>>, %arg3: memref<16x64xf32, #tpu.memory_space<vmem>>) attributes {dimension_semantics = [#tpu.dimension_semantics<arbitrary>], iteration_bounds = array<i64: 1>, scalar_prefetch = 0 : i64, scratch_operands = 0 : i64, tpu.core_type = #tpu.core_type<tc>, window_params = [{transform_indices = @transform_0, window_bounds = array<i64: 2>}, {pipeline_mode = #tpu.pipeline_mode<synchronous>, transform_indices = @transform_1, window_bounds = array<i64: 16, 64>}, {pipeline_mode = #tpu.pipeline_mode<synchronous>, transform_indices = @transform_2, window_bounds = array<i64: 16, 64>}]} {
    %c0 = arith.constant 0 : index
    %c0_0 = arith.constant 0 : index
    %0 = vector.load %arg2[%c0, %c0_0] : memref<16x64xf32, #tpu.memory_space<vmem>>, vector<16x64xf32>
    %c0_1 = arith.constant 0 : index
    %1 = memref.load %arg1[%c0_1] : memref<2xf32, #tpu.memory_space<smem>>
    %c1 = arith.constant 1 : index
    %2 = memref.load %arg1[%c1] : memref<2xf32, #tpu.memory_space<smem>>
    %cst = arith.constant dense<0.000000e+00> : vector<16xf32>
    %3 = vector.multi_reduction <add>, %0, %cst [1] : vector<16x64xf32> to vector<16xf32>
    %4 = vector.shape_cast %3 : vector<16xf32> to vector<16x1xf32>
    %cst_2 = arith.constant 6.400000e+01 : f32
    %5 = vector.broadcast %cst_2 : f32 to vector<16x1xf32>
    %6 = arith.divf %4, %5 : vector<16x1xf32>
    %7 = vector.broadcast %6 : vector<16x1xf32> to vector<16x64xf32>
    %8 = arith.subf %0, %7 : vector<16x64xf32>
    %9 = arith.mulf %8, %8 : vector<16x64xf32>
    %cst_3 = arith.constant dense<0.000000e+00> : vector<16xf32>
    %10 = vector.multi_reduction <add>, %9, %cst_3 [1] : vector<16x64xf32> to vector<16xf32>
    %11 = vector.shape_cast %10 : vector<16xf32> to vector<16x1xf32>
    %cst_4 = arith.constant 0.0158730168 : f32
    %12 = vector.broadcast %cst_4 : f32 to vector<16x1xf32>
    %13 = arith.mulf %11, %12 : vector<16x1xf32>
    %14 = math.sqrt %13 : vector<16x1xf32>
    %cst_5 = arith.constant 9.99999997E-7 : f32
    %15 = vector.broadcast %cst_5 : f32 to vector<16x1xf32>
    %16 = arith.addf %14, %15 : vector<16x1xf32>
    %17 = tpu.reciprocal %16 {approx = true} : vector<16x1xf32> -> vector<16x1xf32>
    %18 = vector.broadcast %1 : f32 to vector<16x64xf32>
    %19 = arith.mulf %18, %8 : vector<16x64xf32>
    %20 = vector.broadcast %17 : vector<16x1xf32> to vector<16x64xf32>
    %21 = arith.mulf %19, %20 : vector<16x64xf32>
    %22 = vector.broadcast %2 : f32 to vector<16x64xf32>
    %23 = arith.addf %21, %22 : vector<16x64xf32>
    %c0_6 = arith.constant 0 : index
    %c0_7 = arith.constant 0 : index
    %24 = vector.load %arg3[%c0_6, %c0_7] : memref<16x64xf32, #tpu.memory_space<vmem>>, vector<16x64xf32>
    tpu.vector_store %arg3[%c0_6, %c0_7], %23 {strides = array<i32>} : memref<16x64xf32, #tpu.memory_space<vmem>>, vector<16x64xf32>,
    return
  }
  func.func @transform_0(%arg0: i32) -> i32 {
    %c0_i32 = arith.constant 0 : i32
    %c0_i32_0 = arith.constant 0 : i32
    return %c0_i32 : i32
  }
  func.func @transform_1(%arg0: i32) -> (i32, i32) {
    %c0_i32 = arith.constant 0 : i32
    %c0_i32_0 = arith.constant 0 : i32
    %c0_i32_1 = arith.constant 0 : i32
    return %c0_i32, %c0_i32_0 : i32, i32
  }
  func.func @transform_2(%arg0: i32) -> (i32, i32) {
    %c0_i32 = arith.constant 0 : i32
    %c0_i32_0 = arith.constant 0 : i32
    %c0_i32_1 = arith.constant 0 : i32
    return %c0_i32, %c0_i32_0 : i32, i32
  }
}

module attributes {stable_mosaic.version = 11 : i64} {
  func.func @_decoder_block_kernel(%arg0: i32, %arg1: memref<6xf32, #tpu.memory_space<smem>>, %arg2: memref<2x8x64xf32, #tpu.memory_space<vmem>>, %arg3: memref<2x16x64xf32, #tpu.memory_space<vmem>>, %arg4: memref<2x8x8xf32, #tpu.memory_space<vmem>>, %arg5: memref<2x8x16xf32, #tpu.memory_space<vmem>>, %arg6: memref<64x192xf32, #tpu.memory_space<vmem>>, %arg7: memref<1x192xf32, #tpu.memory_space<vmem>>, %arg8: memref<64x64xf32, #tpu.memory_space<vmem>>, %arg9: memref<1x64xf32, #tpu.memory_space<vmem>>, %arg10: memref<64x64xf32, #tpu.memory_space<vmem>>, %arg11: memref<1x64xf32, #tpu.memory_space<vmem>>, %arg12: memref<64x128xf32, #tpu.memory_space<vmem>>, %arg13: memref<1x128xf32, #tpu.memory_space<vmem>>, %arg14: memref<64x64xf32, #tpu.memory_space<vmem>>, %arg15: memref<1x64xf32, #tpu.memory_space<vmem>>, %arg16: memref<64x128xf32, #tpu.memory_space<vmem>>, %arg17: memref<1x128xf32, #tpu.memory_space<vmem>>, %arg18: memref<128x64xf32, #tpu.memory_space<vmem>>, %arg19: memref<1x64xf32, #tpu.memory_space<vmem>>, %arg20: memref<2x8x64xf32, #tpu.memory_space<vmem>>) attributes {dimension_semantics = [#tpu.dimension_semantics<arbitrary>], iteration_bounds = array<i64: 1>, scalar_prefetch = 0 : i64, scratch_operands = 0 : i64, tpu.core_type = #tpu.core_type<tc>, window_params = [{transform_indices = @transform_0, window_bounds = array<i64: 6>}, {pipeline_mode = #tpu.pipeline_mode<synchronous>, transform_indices = @transform_1, window_bounds = array<i64: 2, 8, 64>}, {pipeline_mode = #tpu.pipeline_mode<synchronous>, transform_indices = @transform_2, window_bounds = array<i64: 2, 16, 64>}, {pipeline_mode = #tpu.pipeline_mode<synchronous>, transform_indices = @transform_3, window_bounds = array<i64: 2, 8, 8>}, {pipeline_mode = #tpu.pipeline_mode<synchronous>, transform_indices = @transform_4, window_bounds = array<i64: 2, 8, 16>}, {pipeline_mode = #tpu.pipeline_mode<synchronous>, transform_indices = @transform_5, window_bounds = array<i64: 64, 192>}, {pipeline_mode = #tpu.pipeline_mode<synchronous>, transform_indices = @transform_6, window_bounds = array<i64: 1, 192>}, {pipeline_mode = #tpu.pipeline_mode<synchronous>, transform_indices = @transform_7, window_bounds = array<i64: 64, 64>}, {pipeline_mode = #tpu.pipeline_mode<synchronous>, transform_indices = @transform_8, window_bounds = array<i64: 1, 64>}, {pipeline_mode = #tpu.pipeline_mode<synchronous>, transform_indices = @transform_9, window_bounds = array<i64: 64, 64>}, {pipeline_mode = #tpu.pipeline_mode<synchronous>, transform_indices = @transform_10, window_bounds = array<i64: 1, 64>}, {pipeline_mode = #tpu.pipeline_mode<synchronous>, transform_indices = @transform_11, window_bounds = array<i64: 64, 128>}, {pipeline_mode = #tpu.pipeline_mode<synchronous>, transform_indices = @transform_12, window_bounds = array<i64: 1, 128>}, {pipeline_mode = #tpu.pipeline_mode<synchronous>, transform_indices = @transform_13, window_bounds = array<i64: 64, 64>}, {pipeline_mode = #tpu.pipeline_mode<synchronous>, transform_indices = @transform_14, window_bounds = array<i64: 1, 64>}, {pipeline_mode = #tpu.pipeline_mode<synchronous>, transform_indices = @transform_15, window_bounds = array<i64: 64, 128>}, {pipeline_mode = #tpu.pipeline_mode<synchronous>, transform_indices = @transform_16, window_bounds = array<i64: 1, 128>}, {pipeline_mode = #tpu.pipeline_mode<synchronous>, transform_indices = @transform_17, window_bounds = array<i64: 128, 64>}, {pipeline_mode = #tpu.pipeline_mode<synchronous>, transform_indices = @transform_18, window_bounds = array<i64: 1, 64>}, {pipeline_mode = #tpu.pipeline_mode<synchronous>, transform_indices = @transform_19, window_bounds = array<i64: 2, 8, 64>}]} {
    %c0 = arith.constant 0 : index
    %c0_0 = arith.constant 0 : index
    %c0_1 = arith.constant 0 : index
    %0 = vector.load %arg2[%c0, %c0_0, %c0_1] : memref<2x8x64xf32, #tpu.memory_space<vmem>>, vector<2x8x64xf32>
    %1 = vector.shape_cast %0 : vector<2x8x64xf32> to vector<16x64xf32>
    %c0_2 = arith.constant 0 : index
    %c0_3 = arith.constant 0 : index
    %c0_4 = arith.constant 0 : index
    %2 = vector.load %arg3[%c0_2, %c0_3, %c0_4] : memref<2x16x64xf32, #tpu.memory_space<vmem>>, vector<2x16x64xf32>
    %3 = vector.shape_cast %2 : vector<2x16x64xf32> to vector<32x64xf32>
    %c0_5 = arith.constant 0 : index
    %c0_6 = arith.constant 0 : index
    %c0_7 = arith.constant 0 : index
    %4 = vector.load %arg4[%c0_5, %c0_6, %c0_7] : memref<2x8x8xf32, #tpu.memory_space<vmem>>, vector<2x8x8xf32>
    %c0_8 = arith.constant 0 : index
    %c0_9 = arith.constant 0 : index
    %c0_10 = arith.constant 0 : index
    %5 = vector.load %arg5[%c0_8, %c0_9, %c0_10] : memref<2x8x16xf32, #tpu.memory_space<vmem>>, vector<2x8x16xf32>
    %c0_11 = arith.constant 0 : index
    %6 = memref.load %arg1[%c0_11] : memref<6xf32, #tpu.memory_space<smem>>
    %c1 = arith.constant 1 : index
    %7 = memref.load %arg1[%c1] : memref<6xf32, #tpu.memory_space<smem>>
    %cst = arith.constant dense<0.000000e+00> : vector<16xf32>
    %8 = vector.multi_reduction <add>, %1, %cst [1] : vector<16x64xf32> to vector<16xf32>
    %9 = vector.shape_cast %8 : vector<16xf32> to vector<16x1xf32>
    %cst_12 = arith.constant 6.400000e+01 : f32
    %10 = vector.broadcast %cst_12 : f32 to vector<16x1xf32>
    %11 = arith.divf %9, %10 : vector<16x1xf32>
    %12 = vector.broadcast %11 : vector<16x1xf32> to vector<16x64xf32>
    %13 = arith.subf %1, %12 : vector<16x64xf32>
    %14 = arith.mulf %13, %13 : vector<16x64xf32>
    %cst_13 = arith.constant dense<0.000000e+00> : vector<16xf32>
    %15 = vector.multi_reduction <add>, %14, %cst_13 [1] : vector<16x64xf32> to vector<16xf32>
    %16 = vector.shape_cast %15 : vector<16xf32> to vector<16x1xf32>
    %cst_14 = arith.constant 0.0158730168 : f32
    %17 = vector.broadcast %cst_14 : f32 to vector<16x1xf32>
    %18 = arith.mulf %16, %17 : vector<16x1xf32>
    %19 = math.sqrt %18 : vector<16x1xf32>
    %cst_15 = arith.constant 9.99999997E-7 : f32
    %20 = vector.broadcast %cst_15 : f32 to vector<16x1xf32>
    %21 = arith.addf %19, %20 : vector<16x1xf32>
    %22 = tpu.reciprocal %21 {approx = true} : vector<16x1xf32> -> vector<16x1xf32>
    %23 = vector.broadcast %6 : f32 to vector<16x64xf32>
    %24 = arith.mulf %23, %13 : vector<16x64xf32>
    %25 = vector.broadcast %22 : vector<16x1xf32> to vector<16x64xf32>
    %26 = arith.mulf %24, %25 : vector<16x64xf32>
    %27 = vector.broadcast %7 : f32 to vector<16x64xf32>
    %28 = arith.addf %26, %27 : vector<16x64xf32>
    %c0_16 = arith.constant 0 : index
    %c0_17 = arith.constant 0 : index
    %29 = vector.load %arg6[%c0_16, %c0_17] : memref<64x192xf32, #tpu.memory_space<vmem>>, vector<64x192xf32>
    %cst_18 = arith.constant dense<0.000000e+00> : vector<16x192xf32>
    %30 = tpu.matmul %28, %29, %cst_18 {dimension_numbers = #tpu.dot_dimension_numbers<[1], [0], [0], [1], [0, 0, 1, 1], [], []>} : vector<16x64xf32>, vector<64x192xf32>, vector<16x192xf32> -> vector<16x192xf32>
    %c0_19 = arith.constant 0 : index
    %c0_20 = arith.constant 0 : index
    %31 = vector.load %arg7[%c0_19, %c0_20] : memref<1x192xf32, #tpu.memory_space<vmem>>, vector<1x192xf32>
    %32 = vector.broadcast %31 : vector<1x192xf32> to vector<16x192xf32>
    %33 = arith.addf %30, %32 : vector<16x192xf32>
    %34 = vector.extract_strided_slice %33 {offsets = [0, 0], sizes = [16, 16], strides = [1, 1]} : vector<16x192xf32> to vector<16x16xf32>
    %35 = vector.extract_strided_slice %33 {offsets = [0, 64], sizes = [16, 16], strides = [1, 1]} : vector<16x192xf32> to vector<16x16xf32>
    %36 = vector.extract_strided_slice %33 {offsets = [0, 128], sizes = [16, 16], strides = [1, 1]} : vector<16x192xf32> to vector<16x16xf32>
    %37 = vector.shape_cast %34 : vector<16x16xf32> to vector<2x8x16xf32>
    %38 = vector.shape_cast %35 : vector<16x16xf32> to vector<2x8x16xf32>
    %39 = vector.shape_cast %36 : vector<16x16xf32> to vector<2x8x16xf32>
    "tpu.trace_start"() <{level = 10 : i32, message = "bqd,bkd->bqk"}> : () -> ()
    %cst_21 = arith.constant dense<0.000000e+00> : vector<2x8x8xf32>
    %40 = tpu.matmul %37, %38, %cst_21 {dimension_numbers = #tpu.dot_dimension_numbers<[2], [2], [1], [1], [0, 0, 0, 1, 1, 1], [0], [0]>} : vector<2x8x16xf32>, vector<2x8x16xf32>, vector<2x8x8xf32> -> vector<2x8x8xf32>
    "tpu.trace_stop"() : () -> ()
    %cst_22 = arith.constant 2.500000e-01 : f32
    %41 = vector.broadcast %cst_22 : f32 to vector<2x8x8xf32>
    %42 = arith.mulf %40, %41 : vector<2x8x8xf32>
    %43 = arith.addf %42, %4 : vector<2x8x8xf32>
    %cst_23 = arith.constant dense<0xFF800000> : vector<2x8xf32>
    %44 = vector.multi_reduction <maximumf>, %43, %cst_23 [2] : vector<2x8x8xf32> to vector<2x8xf32>
    %45 = vector.shape_cast %44 : vector<2x8xf32> to vector<2x8x1xf32>
    %46 = vector.broadcast %45 : vector<2x8x1xf32> to vector<2x8x8xf32>
    %47 = arith.subf %43, %46 : vector<2x8x8xf32>
    %48 = math.exp %47 : vector<2x8x8xf32>
    %cst_24 = arith.constant dense<0.000000e+00> : vector<2x8xf32>
    %49 = vector.multi_reduction <add>, %48, %cst_24 [2] : vector<2x8x8xf32> to vector<2x8xf32>
    %50 = vector.shape_cast %49 : vector<2x8xf32> to vector<2x8x1xf32>
    %51 = tpu.reciprocal %50 {approx = true} : vector<2x8x1xf32> -> vector<2x8x1xf32>
    %52 = vector.broadcast %51 : vector<2x8x1xf32> to vector<2x8x8xf32>
    %53 = arith.mulf %48, %52 : vector<2x8x8xf32>
    "tpu.trace_start"() <{level = 10 : i32, message = "bqk,bkd->bqd"}> : () -> ()
    %cst_25 = arith.constant dense<0.000000e+00> : vector<2x8x16xf32>
    %54 = tpu.matmul %53, %39, %cst_25 {dimension_numbers = #tpu.dot_dimension_numbers<[2], [1], [1], [2], [0, 0, 0, 1, 1, 2], [0], [0]>} : vector<2x8x8xf32>, vector<2x8x16xf32>, vector<2x8x16xf32> -> vector<2x8x16xf32>
    "tpu.trace_stop"() : () -> ()
    %55 = vector.shape_cast %54 : vector<2x8x16xf32> to vector<16x16xf32>
    %c0_26 = arith.constant 0 : index
    %c0_27 = arith.constant 0 : index
    %56 = vector.load %arg8[%c0_26, %c0_27] : memref<64x64xf32, #tpu.memory_space<vmem>>, vector<16x64xf32>
    %cst_28 = arith.constant dense<0.000000e+00> : vector<16x64xf32>
    %57 = tpu.matmul %55, %56, %cst_28 {dimension_numbers = #tpu.dot_dimension_numbers<[1], [0], [0], [1], [0, 0, 1, 1], [], []>} : vector<16x16xf32>, vector<16x64xf32>, vector<16x64xf32> -> vector<16x64xf32>
    %58 = vector.extract_strided_slice %33 {offsets = [0, 16], sizes = [16, 16], strides = [1, 1]} : vector<16x192xf32> to vector<16x16xf32>
    %59 = vector.extract_strided_slice %33 {offsets = [0, 80], sizes = [16, 16], strides = [1, 1]} : vector<16x192xf32> to vector<16x16xf32>
    %60 = vector.extract_strided_slice %33 {offsets = [0, 144], sizes = [16, 16], strides = [1, 1]} : vector<16x192xf32> to vector<16x16xf32>
    %61 = vector.shape_cast %58 : vector<16x16xf32> to vector<2x8x16xf32>
    %62 = vector.shape_cast %59 : vector<16x16xf32> to vector<2x8x16xf32>
    %63 = vector.shape_cast %60 : vector<16x16xf32> to vector<2x8x16xf32>
    "tpu.trace_start"() <{level = 10 : i32, message = "bqd,bkd->bqk"}> : () -> ()
    %cst_29 = arith.constant dense<0.000000e+00> : vector<2x8x8xf32>
    %64 = tpu.matmul %61, %62, %cst_29 {dimension_numbers = #tpu.dot_dimension_numbers<[2], [2], [1], [1], [0, 0, 0, 1, 1, 1], [0], [0]>} : vector<2x8x16xf32>, vector<2x8x16xf32>, vector<2x8x8xf32> -> vector<2x8x8xf32>
    "tpu.trace_stop"() : () -> ()
    %cst_30 = arith.constant 2.500000e-01 : f32
    %65 = vector.broadcast %cst_30 : f32 to vector<2x8x8xf32>
    %66 = arith.mulf %64, %65 : vector<2x8x8xf32>
    %67 = arith.addf %66, %4 : vector<2x8x8xf32>
    %cst_31 = arith.constant dense<0xFF800000> : vector<2x8xf32>
    %68 = vector.multi_reduction <maximumf>, %67, %cst_31 [2] : vector<2x8x8xf32> to vector<2x8xf32>
    %69 = vector.shape_cast %68 : vector<2x8xf32> to vector<2x8x1xf32>
    %70 = vector.broadcast %69 : vector<2x8x1xf32> to vector<2x8x8xf32>
    %71 = arith.subf %67, %70 : vector<2x8x8xf32>
    %72 = math.exp %71 : vector<2x8x8xf32>
    %cst_32 = arith.constant dense<0.000000e+00> : vector<2x8xf32>
    %73 = vector.multi_reduction <add>, %72, %cst_32 [2] : vector<2x8x8xf32> to vector<2x8xf32>
    %74 = vector.shape_cast %73 : vector<2x8xf32> to vector<2x8x1xf32>
    %75 = tpu.reciprocal %74 {approx = true} : vector<2x8x1xf32> -> vector<2x8x1xf32>
    %76 = vector.broadcast %75 : vector<2x8x1xf32> to vector<2x8x8xf32>
    %77 = arith.mulf %72, %76 : vector<2x8x8xf32>
    "tpu.trace_start"() <{level = 10 : i32, message = "bqk,bkd->bqd"}> : () -> ()
    %cst_33 = arith.constant dense<0.000000e+00> : vector<2x8x16xf32>
    %78 = tpu.matmul %77, %63, %cst_33 {dimension_numbers = #tpu.dot_dimension_numbers<[2], [1], [1], [2], [0, 0, 0, 1, 1, 2], [0], [0]>} : vector<2x8x8xf32>, vector<2x8x16xf32>, vector<2x8x16xf32> -> vector<2x8x16xf32>
    "tpu.trace_stop"() : () -> ()
    %79 = vector.shape_cast %78 : vector<2x8x16xf32> to vector<16x16xf32>
    %c16 = arith.constant 16 : index
    %c0_34 = arith.constant 0 : index
    %80 = vector.load %arg8[%c16, %c0_34] : memref<64x64xf32, #tpu.memory_space<vmem>>, vector<16x64xf32>
    %cst_35 = arith.constant dense<0.000000e+00> : vector<16x64xf32>
    %81 = tpu.matmul %79, %80, %cst_35 {dimension_numbers = #tpu.dot_dimension_numbers<[1], [0], [0], [1], [0, 0, 1, 1], [], []>} : vector<16x16xf32>, vector<16x64xf32>, vector<16x64xf32> -> vector<16x64xf32>
    %82 = arith.addf %57, %81 : vector<16x64xf32>
    %83 = vector.extract_strided_slice %33 {offsets = [0, 32], sizes = [16, 16], strides = [1, 1]} : vector<16x192xf32> to vector<16x16xf32>
    %84 = vector.extract_strided_slice %33 {offsets = [0, 96], sizes = [16, 16], strides = [1, 1]} : vector<16x192xf32> to vector<16x16xf32>
    %85 = vector.extract_strided_slice %33 {offsets = [0, 160], sizes = [16, 16], strides = [1, 1]} : vector<16x192xf32> to vector<16x16xf32>
    %86 = vector.shape_cast %83 : vector<16x16xf32> to vector<2x8x16xf32>
    %87 = vector.shape_cast %84 : vector<16x16xf32> to vector<2x8x16xf32>
    %88 = vector.shape_cast %85 : vector<16x16xf32> to vector<2x8x16xf32>
    "tpu.trace_start"() <{level = 10 : i32, message = "bqd,bkd->bqk"}> : () -> ()
    %cst_36 = arith.constant dense<0.000000e+00> : vector<2x8x8xf32>
    %89 = tpu.matmul %86, %87, %cst_36 {dimension_numbers = #tpu.dot_dimension_numbers<[2], [2], [1], [1], [0, 0, 0, 1, 1, 1], [0], [0]>} : vector<2x8x16xf32>, vector<2x8x16xf32>, vector<2x8x8xf32> -> vector<2x8x8xf32>
    "tpu.trace_stop"() : () -> ()
    %cst_37 = arith.constant 2.500000e-01 : f32
    %90 = vector.broadcast %cst_37 : f32 to vector<2x8x8xf32>
    %91 = arith.mulf %89, %90 : vector<2x8x8xf32>
    %92 = arith.addf %91, %4 : vector<2x8x8xf32>
    %cst_38 = arith.constant dense<0xFF800000> : vector<2x8xf32>
    %93 = vector.multi_reduction <maximumf>, %92, %cst_38 [2] : vector<2x8x8xf32> to vector<2x8xf32>
    %94 = vector.shape_cast %93 : vector<2x8xf32> to vector<2x8x1xf32>
    %95 = vector.broadcast %94 : vector<2x8x1xf32> to vector<2x8x8xf32>
    %96 = arith.subf %92, %95 : vector<2x8x8xf32>
    %97 = math.exp %96 : vector<2x8x8xf32>
    %cst_39 = arith.constant dense<0.000000e+00> : vector<2x8xf32>
    %98 = vector.multi_reduction <add>, %97, %cst_39 [2] : vector<2x8x8xf32> to vector<2x8xf32>
    %99 = vector.shape_cast %98 : vector<2x8xf32> to vector<2x8x1xf32>
    %100 = tpu.reciprocal %99 {approx = true} : vector<2x8x1xf32> -> vector<2x8x1xf32>
    %101 = vector.broadcast %100 : vector<2x8x1xf32> to vector<2x8x8xf32>
    %102 = arith.mulf %97, %101 : vector<2x8x8xf32>
    "tpu.trace_start"() <{level = 10 : i32, message = "bqk,bkd->bqd"}> : () -> ()
    %cst_40 = arith.constant dense<0.000000e+00> : vector<2x8x16xf32>
    %103 = tpu.matmul %102, %88, %cst_40 {dimension_numbers = #tpu.dot_dimension_numbers<[2], [1], [1], [2], [0, 0, 0, 1, 1, 2], [0], [0]>} : vector<2x8x8xf32>, vector<2x8x16xf32>, vector<2x8x16xf32> -> vector<2x8x16xf32>
    "tpu.trace_stop"() : () -> ()
    %104 = vector.shape_cast %103 : vector<2x8x16xf32> to vector<16x16xf32>
    %c32 = arith.constant 32 : index
    %c0_41 = arith.constant 0 : index
    %105 = vector.load %arg8[%c32, %c0_41] : memref<64x64xf32, #tpu.memory_space<vmem>>, vector<16x64xf32>
    %cst_42 = arith.constant dense<0.000000e+00> : vector<16x64xf32>
    %106 = tpu.matmul %104, %105, %cst_42 {dimension_numbers = #tpu.dot_dimension_numbers<[1], [0], [0], [1], [0, 0, 1, 1], [], []>} : vector<16x16xf32>, vector<16x64xf32>, vector<16x64xf32> -> vector<16x64xf32>
    %107 = arith.addf %82, %106 : vector<16x64xf32>
    %108 = vector.extract_strided_slice %33 {offsets = [0, 48], sizes = [16, 16], strides = [1, 1]} : vector<16x192xf32> to vector<16x16xf32>
    %109 = vector.extract_strided_slice %33 {offsets = [0, 112], sizes = [16, 16], strides = [1, 1]} : vector<16x192xf32> to vector<16x16xf32>
    %110 = vector.extract_strided_slice %33 {offsets = [0, 176], sizes = [16, 16], strides = [1, 1]} : vector<16x192xf32> to vector<16x16xf32>
    %111 = vector.shape_cast %108 : vector<16x16xf32> to vector<2x8x16xf32>
    %112 = vector.shape_cast %109 : vector<16x16xf32> to vector<2x8x16xf32>
    %113 = vector.shape_cast %110 : vector<16x16xf32> to vector<2x8x16xf32>
    "tpu.trace_start"() <{level = 10 : i32, message = "bqd,bkd->bqk"}> : () -> ()
    %cst_43 = arith.constant dense<0.000000e+00> : vector<2x8x8xf32>
    %114 = tpu.matmul %111, %112, %cst_43 {dimension_numbers = #tpu.dot_dimension_numbers<[2], [2], [1], [1], [0, 0, 0, 1, 1, 1], [0], [0]>} : vector<2x8x16xf32>, vector<2x8x16xf32>, vector<2x8x8xf32> -> vector<2x8x8xf32>
    "tpu.trace_stop"() : () -> ()
    %cst_44 = arith.constant 2.500000e-01 : f32
    %115 = vector.broadcast %cst_44 : f32 to vector<2x8x8xf32>
    %116 = arith.mulf %114, %115 : vector<2x8x8xf32>
    %117 = arith.addf %116, %4 : vector<2x8x8xf32>
    %cst_45 = arith.constant dense<0xFF800000> : vector<2x8xf32>
    %118 = vector.multi_reduction <maximumf>, %117, %cst_45 [2] : vector<2x8x8xf32> to vector<2x8xf32>
    %119 = vector.shape_cast %118 : vector<2x8xf32> to vector<2x8x1xf32>
    %120 = vector.broadcast %119 : vector<2x8x1xf32> to vector<2x8x8xf32>
    %121 = arith.subf %117, %120 : vector<2x8x8xf32>
    %122 = math.exp %121 : vector<2x8x8xf32>
    %cst_46 = arith.constant dense<0.000000e+00> : vector<2x8xf32>
    %123 = vector.multi_reduction <add>, %122, %cst_46 [2] : vector<2x8x8xf32> to vector<2x8xf32>
    %124 = vector.shape_cast %123 : vector<2x8xf32> to vector<2x8x1xf32>
    %125 = tpu.reciprocal %124 {approx = true} : vector<2x8x1xf32> -> vector<2x8x1xf32>
    %126 = vector.broadcast %125 : vector<2x8x1xf32> to vector<2x8x8xf32>
    %127 = arith.mulf %122, %126 : vector<2x8x8xf32>
    "tpu.trace_start"() <{level = 10 : i32, message = "bqk,bkd->bqd"}> : () -> ()
    %cst_47 = arith.constant dense<0.000000e+00> : vector<2x8x16xf32>
    %128 = tpu.matmul %127, %113, %cst_47 {dimension_numbers = #tpu.dot_dimension_numbers<[2], [1], [1], [2], [0, 0, 0, 1, 1, 2], [0], [0]>} : vector<2x8x8xf32>, vector<2x8x16xf32>, vector<2x8x16xf32> -> vector<2x8x16xf32>
    "tpu.trace_stop"() : () -> ()
    %129 = vector.shape_cast %128 : vector<2x8x16xf32> to vector<16x16xf32>
    %c48 = arith.constant 48 : index
    %c0_48 = arith.constant 0 : index
    %130 = vector.load %arg8[%c48, %c0_48] : memref<64x64xf32, #tpu.memory_space<vmem>>, vector<16x64xf32>
    %cst_49 = arith.constant dense<0.000000e+00> : vector<16x64xf32>
    %131 = tpu.matmul %129, %130, %cst_49 {dimension_numbers = #tpu.dot_dimension_numbers<[1], [0], [0], [1], [0, 0, 1, 1], [], []>} : vector<16x16xf32>, vector<16x64xf32>, vector<16x64xf32> -> vector<16x64xf32>
    %132 = arith.addf %107, %131 : vector<16x64xf32>
    %c0_50 = arith.constant 0 : index
    %c0_51 = arith.constant 0 : index
    %133 = vector.load %arg9[%c0_50, %c0_51] : memref<1x64xf32, #tpu.memory_space<vmem>>, vector<1x64xf32>
    %134 = vector.broadcast %133 : vector<1x64xf32> to vector<16x64xf32>
    %135 = arith.addf %132, %134 : vector<16x64xf32>
    %136 = arith.addf %1, %135 : vector<16x64xf32>
    %c2 = arith.constant 2 : index
    %137 = memref.load %arg1[%c2] : memref<6xf32, #tpu.memory_space<smem>>
    %c3 = arith.constant 3 : index
    %138 = memref.load %arg1[%c3] : memref<6xf32, #tpu.memory_space<smem>>
    %cst_52 = arith.constant dense<0.000000e+00> : vector<16xf32>
    %139 = vector.multi_reduction <add>, %136, %cst_52 [1] : vector<16x64xf32> to vector<16xf32>
    %140 = vector.shape_cast %139 : vector<16xf32> to vector<16x1xf32>
    %cst_53 = arith.constant 6.400000e+01 : f32
    %141 = vector.broadcast %cst_53 : f32 to vector<16x1xf32>
    %142 = arith.divf %140, %141 : vector<16x1xf32>
    %143 = vector.broadcast %142 : vector<16x1xf32> to vector<16x64xf32>
    %144 = arith.subf %136, %143 : vector<16x64xf32>
    %145 = arith.mulf %144, %144 : vector<16x64xf32>
    %cst_54 = arith.constant dense<0.000000e+00> : vector<16xf32>
    %146 = vector.multi_reduction <add>, %145, %cst_54 [1] : vector<16x64xf32> to vector<16xf32>
    %147 = vector.shape_cast %146 : vector<16xf32> to vector<16x1xf32>
    %cst_55 = arith.constant 0.0158730168 : f32
    %148 = vector.broadcast %cst_55 : f32 to vector<16x1xf32>
    %149 = arith.mulf %147, %148 : vector<16x1xf32>
    %150 = math.sqrt %149 : vector<16x1xf32>
    %cst_56 = arith.constant 9.99999997E-7 : f32
    %151 = vector.broadcast %cst_56 : f32 to vector<16x1xf32>
    %152 = arith.addf %150, %151 : vector<16x1xf32>
    %153 = tpu.reciprocal %152 {approx = true} : vector<16x1xf32> -> vector<16x1xf32>
    %154 = vector.broadcast %137 : f32 to vector<16x64xf32>
    %155 = arith.mulf %154, %144 : vector<16x64xf32>
    %156 = vector.broadcast %153 : vector<16x1xf32> to vector<16x64xf32>
    %157 = arith.mulf %155, %156 : vector<16x64xf32>
    %158 = vector.broadcast %138 : f32 to vector<16x64xf32>
    %159 = arith.addf %157, %158 : vector<16x64xf32>
    %c0_57 = arith.constant 0 : index
    %c0_58 = arith.constant 0 : index
    %160 = vector.load %arg10[%c0_57, %c0_58] : memref<64x64xf32, #tpu.memory_space<vmem>>, vector<64x64xf32>
    %cst_59 = arith.constant dense<0.000000e+00> : vector<16x64xf32>
    %161 = tpu.matmul %159, %160, %cst_59 {dimension_numbers = #tpu.dot_dimension_numbers<[1], [0], [0], [1], [0, 0, 1, 1], [], []>} : vector<16x64xf32>, vector<64x64xf32>, vector<16x64xf32> -> vector<16x64xf32>
    %c0_60 = arith.constant 0 : index
    %c0_61 = arith.constant 0 : index
    %162 = vector.load %arg11[%c0_60, %c0_61] : memref<1x64xf32, #tpu.memory_space<vmem>>, vector<1x64xf32>
    %163 = vector.broadcast %162 : vector<1x64xf32> to vector<16x64xf32>
    %164 = arith.addf %161, %163 : vector<16x64xf32>
    %c0_62 = arith.constant 0 : index
    %c0_63 = arith.constant 0 : index
    %165 = vector.load %arg12[%c0_62, %c0_63] : memref<64x128xf32, #tpu.memory_space<vmem>>, vector<64x128xf32>
    %cst_64 = arith.constant dense<0.000000e+00> : vector<32x128xf32>
    %166 = tpu.matmul %3, %165, %cst_64 {dimension_numbers = #tpu.dot_dimension_numbers<[1], [0], [0], [1], [0, 0, 1, 1], [], []>} : vector<32x64xf32>, vector<64x128xf32>, vector<32x128xf32> -> vector<32x128xf32>
    %c0_65 = arith.constant 0 : index
    %c0_66 = arith.constant 0 : index
    %167 = vector.load %arg13[%c0_65, %c0_66] : memref<1x128xf32, #tpu.memory_space<vmem>>, vector<1x128xf32>
    %168 = vector.broadcast %167 : vector<1x128xf32> to vector<32x128xf32>
    %169 = arith.addf %166, %168 : vector<32x128xf32>
    %170 = vector.extract_strided_slice %164 {offsets = [0, 0], sizes = [16, 16], strides = [1, 1]} : vector<16x64xf32> to vector<16x16xf32>
    %171 = vector.extract_strided_slice %169 {offsets = [0, 0], sizes = [32, 16], strides = [1, 1]} : vector<32x128xf32> to vector<32x16xf32>
    %172 = vector.extract_strided_slice %169 {offsets = [0, 64], sizes = [32, 16], strides = [1, 1]} : vector<32x128xf32> to vector<32x16xf32>
    %173 = vector.shape_cast %170 : vector<16x16xf32> to vector<2x8x16xf32>
    %174 = vector.shape_cast %171 : vector<32x16xf32> to vector<2x16x16xf32>
    %175 = vector.shape_cast %172 : vector<32x16xf32> to vector<2x16x16xf32>
    "tpu.trace_start"() <{level = 10 : i32, message = "bqd,bkd->bqk"}> : () -> ()
    %cst_67 = arith.constant dense<0.000000e+00> : vector<2x8x16xf32>
    %176 = tpu.matmul %173, %174, %cst_67 {dimension_numbers = #tpu.dot_dimension_numbers<[2], [2], [1], [1], [0, 0, 0, 1, 1, 1], [0], [0]>} : vector<2x8x16xf32>, vector<2x16x16xf32>, vector<2x8x16xf32> -> vector<2x8x16xf32>
    "tpu.trace_stop"() : () -> ()
    %cst_68 = arith.constant 2.500000e-01 : f32
    %177 = vector.broadcast %cst_68 : f32 to vector<2x8x16xf32>
    %178 = arith.mulf %176, %177 : vector<2x8x16xf32>
    %179 = arith.addf %178, %5 : vector<2x8x16xf32>
    %cst_69 = arith.constant dense<0xFF800000> : vector<2x8xf32>
    %180 = vector.multi_reduction <maximumf>, %179, %cst_69 [2] : vector<2x8x16xf32> to vector<2x8xf32>
    %181 = vector.shape_cast %180 : vector<2x8xf32> to vector<2x8x1xf32>
    %182 = vector.broadcast %181 : vector<2x8x1xf32> to vector<2x8x16xf32>
    %183 = arith.subf %179, %182 : vector<2x8x16xf32>
    %184 = math.exp %183 : vector<2x8x16xf32>
    %cst_70 = arith.constant dense<0.000000e+00> : vector<2x8xf32>
    %185 = vector.multi_reduction <add>, %184, %cst_70 [2] : vector<2x8x16xf32> to vector<2x8xf32>
    %186 = vector.shape_cast %185 : vector<2x8xf32> to vector<2x8x1xf32>
    %187 = tpu.reciprocal %186 {approx = true} : vector<2x8x1xf32> -> vector<2x8x1xf32>
    %188 = vector.broadcast %187 : vector<2x8x1xf32> to vector<2x8x16xf32>
    %189 = arith.mulf %184, %188 : vector<2x8x16xf32>
    "tpu.trace_start"() <{level = 10 : i32, message = "bqk,bkd->bqd"}> : () -> ()
    %cst_71 = arith.constant dense<0.000000e+00> : vector<2x8x16xf32>
    %190 = tpu.matmul %189, %175, %cst_71 {dimension_numbers = #tpu.dot_dimension_numbers<[2], [1], [1], [2], [0, 0, 0, 1, 1, 2], [0], [0]>} : vector<2x8x16xf32>, vector<2x16x16xf32>, vector<2x8x16xf32> -> vector<2x8x16xf32>
    "tpu.trace_stop"() : () -> ()
    %191 = vector.shape_cast %190 : vector<2x8x16xf32> to vector<16x16xf32>
    %c0_72 = arith.constant 0 : index
    %c0_73 = arith.constant 0 : index
    %192 = vector.load %arg14[%c0_72, %c0_73] : memref<64x64xf32, #tpu.memory_space<vmem>>, vector<16x64xf32>
    %cst_74 = arith.constant dense<0.000000e+00> : vector<16x64xf32>
    %193 = tpu.matmul %191, %192, %cst_74 {dimension_numbers = #tpu.dot_dimension_numbers<[1], [0], [0], [1], [0, 0, 1, 1], [], []>} : vector<16x16xf32>, vector<16x64xf32>, vector<16x64xf32> -> vector<16x64xf32>
    %194 = vector.extract_strided_slice %164 {offsets = [0, 16], sizes = [16, 16], strides = [1, 1]} : vector<16x64xf32> to vector<16x16xf32>
    %195 = vector.extract_strided_slice %169 {offsets = [0, 16], sizes = [32, 16], strides = [1, 1]} : vector<32x128xf32> to vector<32x16xf32>
    %196 = vector.extract_strided_slice %169 {offsets = [0, 80], sizes = [32, 16], strides = [1, 1]} : vector<32x128xf32> to vector<32x16xf32>
    %197 = vector.shape_cast %194 : vector<16x16xf32> to vector<2x8x16xf32>
    %198 = vector.shape_cast %195 : vector<32x16xf32> to vector<2x16x16xf32>
    %199 = vector.shape_cast %196 : vector<32x16xf32> to vector<2x16x16xf32>
    "tpu.trace_start"() <{level = 10 : i32, message = "bqd,bkd->bqk"}> : () -> ()
    %cst_75 = arith.constant dense<0.000000e+00> : vector<2x8x16xf32>
    %200 = tpu.matmul %197, %198, %cst_75 {dimension_numbers = #tpu.dot_dimension_numbers<[2], [2], [1], [1], [0, 0, 0, 1, 1, 1], [0], [0]>} : vector<2x8x16xf32>, vector<2x16x16xf32>, vector<2x8x16xf32> -> vector<2x8x16xf32>
    "tpu.trace_stop"() : () -> ()
    %cst_76 = arith.constant 2.500000e-01 : f32
    %201 = vector.broadcast %cst_76 : f32 to vector<2x8x16xf32>
    %202 = arith.mulf %200, %201 : vector<2x8x16xf32>
    %203 = arith.addf %202, %5 : vector<2x8x16xf32>
    %cst_77 = arith.constant dense<0xFF800000> : vector<2x8xf32>
    %204 = vector.multi_reduction <maximumf>, %203, %cst_77 [2] : vector<2x8x16xf32> to vector<2x8xf32>
    %205 = vector.shape_cast %204 : vector<2x8xf32> to vector<2x8x1xf32>
    %206 = vector.broadcast %205 : vector<2x8x1xf32> to vector<2x8x16xf32>
    %207 = arith.subf %203, %206 : vector<2x8x16xf32>
    %208 = math.exp %207 : vector<2x8x16xf32>
    %cst_78 = arith.constant dense<0.000000e+00> : vector<2x8xf32>
    %209 = vector.multi_reduction <add>, %208, %cst_78 [2] : vector<2x8x16xf32> to vector<2x8xf32>
    %210 = vector.shape_cast %209 : vector<2x8xf32> to vector<2x8x1xf32>
    %211 = tpu.reciprocal %210 {approx = true} : vector<2x8x1xf32> -> vector<2x8x1xf32>
    %212 = vector.broadcast %211 : vector<2x8x1xf32> to vector<2x8x16xf32>
    %213 = arith.mulf %208, %212 : vector<2x8x16xf32>
    "tpu.trace_start"() <{level = 10 : i32, message = "bqk,bkd->bqd"}> : () -> ()
    %cst_79 = arith.constant dense<0.000000e+00> : vector<2x8x16xf32>
    %214 = tpu.matmul %213, %199, %cst_79 {dimension_numbers = #tpu.dot_dimension_numbers<[2], [1], [1], [2], [0, 0, 0, 1, 1, 2], [0], [0]>} : vector<2x8x16xf32>, vector<2x16x16xf32>, vector<2x8x16xf32> -> vector<2x8x16xf32>
    "tpu.trace_stop"() : () -> ()
    %215 = vector.shape_cast %214 : vector<2x8x16xf32> to vector<16x16xf32>
    %c16_80 = arith.constant 16 : index
    %c0_81 = arith.constant 0 : index
    %216 = vector.load %arg14[%c16_80, %c0_81] : memref<64x64xf32, #tpu.memory_space<vmem>>, vector<16x64xf32>
    %cst_82 = arith.constant dense<0.000000e+00> : vector<16x64xf32>
    %217 = tpu.matmul %215, %216, %cst_82 {dimension_numbers = #tpu.dot_dimension_numbers<[1], [0], [0], [1], [0, 0, 1, 1], [], []>} : vector<16x16xf32>, vector<16x64xf32>, vector<16x64xf32> -> vector<16x64xf32>
    %218 = arith.addf %193, %217 : vector<16x64xf32>
    %219 = vector.extract_strided_slice %164 {offsets = [0, 32], sizes = [16, 16], strides = [1, 1]} : vector<16x64xf32> to vector<16x16xf32>
    %220 = vector.extract_strided_slice %169 {offsets = [0, 32], sizes = [32, 16], strides = [1, 1]} : vector<32x128xf32> to vector<32x16xf32>
    %221 = vector.extract_strided_slice %169 {offsets = [0, 96], sizes = [32, 16], strides = [1, 1]} : vector<32x128xf32> to vector<32x16xf32>
    %222 = vector.shape_cast %219 : vector<16x16xf32> to vector<2x8x16xf32>
    %223 = vector.shape_cast %220 : vector<32x16xf32> to vector<2x16x16xf32>
    %224 = vector.shape_cast %221 : vector<32x16xf32> to vector<2x16x16xf32>
    "tpu.trace_start"() <{level = 10 : i32, message = "bqd,bkd->bqk"}> : () -> ()
    %cst_83 = arith.constant dense<0.000000e+00> : vector<2x8x16xf32>
    %225 = tpu.matmul %222, %223, %cst_83 {dimension_numbers = #tpu.dot_dimension_numbers<[2], [2], [1], [1], [0, 0, 0, 1, 1, 1], [0], [0]>} : vector<2x8x16xf32>, vector<2x16x16xf32>, vector<2x8x16xf32> -> vector<2x8x16xf32>
    "tpu.trace_stop"() : () -> ()
    %cst_84 = arith.constant 2.500000e-01 : f32
    %226 = vector.broadcast %cst_84 : f32 to vector<2x8x16xf32>
    %227 = arith.mulf %225, %226 : vector<2x8x16xf32>
    %228 = arith.addf %227, %5 : vector<2x8x16xf32>
    %cst_85 = arith.constant dense<0xFF800000> : vector<2x8xf32>
    %229 = vector.multi_reduction <maximumf>, %228, %cst_85 [2] : vector<2x8x16xf32> to vector<2x8xf32>
    %230 = vector.shape_cast %229 : vector<2x8xf32> to vector<2x8x1xf32>
    %231 = vector.broadcast %230 : vector<2x8x1xf32> to vector<2x8x16xf32>
    %232 = arith.subf %228, %231 : vector<2x8x16xf32>
    %233 = math.exp %232 : vector<2x8x16xf32>
    %cst_86 = arith.constant dense<0.000000e+00> : vector<2x8xf32>
    %234 = vector.multi_reduction <add>, %233, %cst_86 [2] : vector<2x8x16xf32> to vector<2x8xf32>
    %235 = vector.shape_cast %234 : vector<2x8xf32> to vector<2x8x1xf32>
    %236 = tpu.reciprocal %235 {approx = true} : vector<2x8x1xf32> -> vector<2x8x1xf32>
    %237 = vector.broadcast %236 : vector<2x8x1xf32> to vector<2x8x16xf32>
    %238 = arith.mulf %233, %237 : vector<2x8x16xf32>
    "tpu.trace_start"() <{level = 10 : i32, message = "bqk,bkd->bqd"}> : () -> ()
    %cst_87 = arith.constant dense<0.000000e+00> : vector<2x8x16xf32>
    %239 = tpu.matmul %238, %224, %cst_87 {dimension_numbers = #tpu.dot_dimension_numbers<[2], [1], [1], [2], [0, 0, 0, 1, 1, 2], [0], [0]>} : vector<2x8x16xf32>, vector<2x16x16xf32>, vector<2x8x16xf32> -> vector<2x8x16xf32>
    "tpu.trace_stop"() : () -> ()
    %240 = vector.shape_cast %239 : vector<2x8x16xf32> to vector<16x16xf32>
    %c32_88 = arith.constant 32 : index
    %c0_89 = arith.constant 0 : index
    %241 = vector.load %arg14[%c32_88, %c0_89] : memref<64x64xf32, #tpu.memory_space<vmem>>, vector<16x64xf32>
    %cst_90 = arith.constant dense<0.000000e+00> : vector<16x64xf32>
    %242 = tpu.matmul %240, %241, %cst_90 {dimension_numbers = #tpu.dot_dimension_numbers<[1], [0], [0], [1], [0, 0, 1, 1], [], []>} : vector<16x16xf32>, vector<16x64xf32>, vector<16x64xf32> -> vector<16x64xf32>
    %243 = arith.addf %218, %242 : vector<16x64xf32>
    %244 = vector.extract_strided_slice %164 {offsets = [0, 48], sizes = [16, 16], strides = [1, 1]} : vector<16x64xf32> to vector<16x16xf32>
    %245 = vector.extract_strided_slice %169 {offsets = [0, 48], sizes = [32, 16], strides = [1, 1]} : vector<32x128xf32> to vector<32x16xf32>
    %246 = vector.extract_strided_slice %169 {offsets = [0, 112], sizes = [32, 16], strides = [1, 1]} : vector<32x128xf32> to vector<32x16xf32>
    %247 = vector.shape_cast %244 : vector<16x16xf32> to vector<2x8x16xf32>
    %248 = vector.shape_cast %245 : vector<32x16xf32> to vector<2x16x16xf32>
    %249 = vector.shape_cast %246 : vector<32x16xf32> to vector<2x16x16xf32>
    "tpu.trace_start"() <{level = 10 : i32, message = "bqd,bkd->bqk"}> : () -> ()
    %cst_91 = arith.constant dense<0.000000e+00> : vector<2x8x16xf32>
    %250 = tpu.matmul %247, %248, %cst_91 {dimension_numbers = #tpu.dot_dimension_numbers<[2], [2], [1], [1], [0, 0, 0, 1, 1, 1], [0], [0]>} : vector<2x8x16xf32>, vector<2x16x16xf32>, vector<2x8x16xf32> -> vector<2x8x16xf32>
    "tpu.trace_stop"() : () -> ()
    %cst_92 = arith.constant 2.500000e-01 : f32
    %251 = vector.broadcast %cst_92 : f32 to vector<2x8x16xf32>
    %252 = arith.mulf %250, %251 : vector<2x8x16xf32>
    %253 = arith.addf %252, %5 : vector<2x8x16xf32>
    %cst_93 = arith.constant dense<0xFF800000> : vector<2x8xf32>
    %254 = vector.multi_reduction <maximumf>, %253, %cst_93 [2] : vector<2x8x16xf32> to vector<2x8xf32>
    %255 = vector.shape_cast %254 : vector<2x8xf32> to vector<2x8x1xf32>
    %256 = vector.broadcast %255 : vector<2x8x1xf32> to vector<2x8x16xf32>
    %257 = arith.subf %253, %256 : vector<2x8x16xf32>
    %258 = math.exp %257 : vector<2x8x16xf32>
    %cst_94 = arith.constant dense<0.000000e+00> : vector<2x8xf32>
    %259 = vector.multi_reduction <add>, %258, %cst_94 [2] : vector<2x8x16xf32> to vector<2x8xf32>
    %260 = vector.shape_cast %259 : vector<2x8xf32> to vector<2x8x1xf32>
    %261 = tpu.reciprocal %260 {approx = true} : vector<2x8x1xf32> -> vector<2x8x1xf32>
    %262 = vector.broadcast %261 : vector<2x8x1xf32> to vector<2x8x16xf32>
    %263 = arith.mulf %258, %262 : vector<2x8x16xf32>
    "tpu.trace_start"() <{level = 10 : i32, message = "bqk,bkd->bqd"}> : () -> ()
    %cst_95 = arith.constant dense<0.000000e+00> : vector<2x8x16xf32>
    %264 = tpu.matmul %263, %249, %cst_95 {dimension_numbers = #tpu.dot_dimension_numbers<[2], [1], [1], [2], [0, 0, 0, 1, 1, 2], [0], [0]>} : vector<2x8x16xf32>, vector<2x16x16xf32>, vector<2x8x16xf32> -> vector<2x8x16xf32>
    "tpu.trace_stop"() : () -> ()
    %265 = vector.shape_cast %264 : vector<2x8x16xf32> to vector<16x16xf32>
    %c48_96 = arith.constant 48 : index
    %c0_97 = arith.constant 0 : index
    %266 = vector.load %arg14[%c48_96, %c0_97] : memref<64x64xf32, #tpu.memory_space<vmem>>, vector<16x64xf32>
    %cst_98 = arith.constant dense<0.000000e+00> : vector<16x64xf32>
    %267 = tpu.matmul %265, %266, %cst_98 {dimension_numbers = #tpu.dot_dimension_numbers<[1], [0], [0], [1], [0, 0, 1, 1], [], []>} : vector<16x16xf32>, vector<16x64xf32>, vector<16x64xf32> -> vector<16x64xf32>
    %268 = arith.addf %243, %267 : vector<16x64xf32>
    %c0_99 = arith.constant 0 : index
    %c0_100 = arith.constant 0 : index
    %269 = vector.load %arg15[%c0_99, %c0_100] : memref<1x64xf32, #tpu.memory_space<vmem>>, vector<1x64xf32>
    %270 = vector.broadcast %269 : vector<1x64xf32> to vector<16x64xf32>
    %271 = arith.addf %268, %270 : vector<16x64xf32>
    %272 = arith.addf %136, %271 : vector<16x64xf32>
    %c4 = arith.constant 4 : index
    %273 = memref.load %arg1[%c4] : memref<6xf32, #tpu.memory_space<smem>>
    %c5 = arith.constant 5 : index
    %274 = memref.load %arg1[%c5] : memref<6xf32, #tpu.memory_space<smem>>
    %cst_101 = arith.constant dense<0.000000e+00> : vector<16xf32>
    %275 = vector.multi_reduction <add>, %272, %cst_101 [1] : vector<16x64xf32> to vector<16xf32>
    %276 = vector.shape_cast %275 : vector<16xf32> to vector<16x1xf32>
    %cst_102 = arith.constant 6.400000e+01 : f32
    %277 = vector.broadcast %cst_102 : f32 to vector<16x1xf32>
    %278 = arith.divf %276, %277 : vector<16x1xf32>
    %279 = vector.broadcast %278 : vector<16x1xf32> to vector<16x64xf32>
    %280 = arith.subf %272, %279 : vector<16x64xf32>
    %281 = arith.mulf %280, %280 : vector<16x64xf32>
    %cst_103 = arith.constant dense<0.000000e+00> : vector<16xf32>
    %282 = vector.multi_reduction <add>, %281, %cst_103 [1] : vector<16x64xf32> to vector<16xf32>
    %283 = vector.shape_cast %282 : vector<16xf32> to vector<16x1xf32>
    %cst_104 = arith.constant 0.0158730168 : f32
    %284 = vector.broadcast %cst_104 : f32 to vector<16x1xf32>
    %285 = arith.mulf %283, %284 : vector<16x1xf32>
    %286 = math.sqrt %285 : vector<16x1xf32>
    %cst_105 = arith.constant 9.99999997E-7 : f32
    %287 = vector.broadcast %cst_105 : f32 to vector<16x1xf32>
    %288 = arith.addf %286, %287 : vector<16x1xf32>
    %289 = tpu.reciprocal %288 {approx = true} : vector<16x1xf32> -> vector<16x1xf32>
    %290 = vector.broadcast %273 : f32 to vector<16x64xf32>
    %291 = arith.mulf %290, %280 : vector<16x64xf32>
    %292 = vector.broadcast %289 : vector<16x1xf32> to vector<16x64xf32>
    %293 = arith.mulf %291, %292 : vector<16x64xf32>
    %294 = vector.broadcast %274 : f32 to vector<16x64xf32>
    %295 = arith.addf %293, %294 : vector<16x64xf32>
    %c0_106 = arith.constant 0 : index
    %c0_107 = arith.constant 0 : index
    %296 = vector.load %arg16[%c0_106, %c0_107] : memref<64x128xf32, #tpu.memory_space<vmem>>, vector<64x128xf32>
    %cst_108 = arith.constant dense<0.000000e+00> : vector<16x128xf32>
    %297 = tpu.matmul %295, %296, %cst_108 {dimension_numbers = #tpu.dot_dimension_numbers<[1], [0], [0], [1], [0, 0, 1, 1], [], []>} : vector<16x64xf32>, vector<64x128xf32>, vector<16x128xf32> -> vector<16x128xf32>
    %c0_109 = arith.constant 0 : index
    %c0_110 = arith.constant 0 : index
    %298 = vector.load %arg17[%c0_109, %c0_110] : memref<1x128xf32, #tpu.memory_space<vmem>>, vector<1x128xf32>
    %299 = vector.broadcast %298 : vector<1x128xf32> to vector<16x128xf32>
    %300 = arith.addf %297, %299 : vector<16x128xf32>
    %cst_111 = arith.constant 0.000000e+00 : f32
    %301 = vector.broadcast %cst_111 : f32 to vector<16x128xf32>
    %302 = arith.maximumf %300, %301 : vector<16x128xf32>
    %c0_112 = arith.constant 0 : index
    %c0_113 = arith.constant 0 : index
    %303 = vector.load %arg18[%c0_112, %c0_113] : memref<128x64xf32, #tpu.memory_space<vmem>>, vector<128x64xf32>
    %cst_114 = arith.constant dense<0.000000e+00> : vector<16x64xf32>
    %304 = tpu.matmul %302, %303, %cst_114 {dimension_numbers = #tpu.dot_dimension_numbers<[1], [0], [0], [1], [0, 0, 1, 1], [], []>} : vector<16x128xf32>, vector<128x64xf32>, vector<16x64xf32> -> vector<16x64xf32>
    %305 = arith.addf %272, %304 : vector<16x64xf32>
    %c0_115 = arith.constant 0 : index
    %c0_116 = arith.constant 0 : index
    %306 = vector.load %arg19[%c0_115, %c0_116] : memref<1x64xf32, #tpu.memory_space<vmem>>, vector<1x64xf32>
    %307 = vector.broadcast %306 : vector<1x64xf32> to vector<16x64xf32>
    %308 = arith.addf %305, %307 : vector<16x64xf32>
    %309 = vector.shape_cast %308 : vector<16x64xf32> to vector<2x8x64xf32>
    %c0_117 = arith.constant 0 : index
    %c0_118 = arith.constant 0 : index
    %c0_119 = arith.constant 0 : index
    %310 = vector.load %arg20[%c0_117, %c0_118, %c0_119] : memref<2x8x64xf32, #tpu.memory_space<vmem>>, vector<2x8x64xf32>
    tpu.vector_store %arg20[%c0_117, %c0_118, %c0_119], %309 {strides = array<i32>} : memref<2x8x64xf32, #tpu.memory_space<vmem>>, vector<2x8x64xf32>,
    return
  }
  func.func @transform_0(%arg0: i32) -> i32 {
    %c0_i32 = arith.constant 0 : i32
    %c0_i32_0 = arith.constant 0 : i32
    return %c0_i32 : i32
  }
  func.func @transform_1(%arg0: i32) -> (i32, i32, i32) {
    %c0_i32 = arith.constant 0 : i32
    %c0_i32_0 = arith.constant 0 : i32
    %c0_i32_1 = arith.constant 0 : i32
    %c0_i32_2 = arith.constant 0 : i32
    return %c0_i32, %c0_i32_0, %c0_i32_1 : i32, i32, i32
  }
  func.func @transform_2(%arg0: i32) -> (i32, i32, i32) {
    %c0_i32 = arith.constant 0 : i32
    %c0_i32_0 = arith.constant 0 : i32
    %c0_i32_1 = arith.constant 0 : i32
    %c0_i32_2 = arith.constant 0 : i32
    return %c0_i32, %c0_i32_0, %c0_i32_1 : i32, i32, i32
  }
  func.func @transform_3(%arg0: i32) -> (i32, i32, i32) {
    %c0_i32 = arith.constant 0 : i32
    %c0_i32_0 = arith.constant 0 : i32
    %c0_i32_1 = arith.constant 0 : i32
    %c0_i32_2 = arith.constant 0 : i32
    return %c0_i32, %c0_i32_0, %c0_i32_1 : i32, i32, i32
  }
  func.func @transform_4(%arg0: i32) -> (i32, i32, i32) {
    %c0_i32 = arith.constant 0 : i32
    %c0_i32_0 = arith.constant 0 : i32
    %c0_i32_1 = arith.constant 0 : i32
    %c0_i32_2 = arith.constant 0 : i32
    return %c0_i32, %c0_i32_0, %c0_i32_1 : i32, i32, i32
  }
  func.func @transform_5(%arg0: i32) -> (i32, i32) {
    %c0_i32 = arith.constant 0 : i32
    %c0_i32_0 = arith.constant 0 : i32
    %c0_i32_1 = arith.constant 0 : i32
    return %c0_i32, %c0_i32_0 : i32, i32
  }
  func.func @transform_6(%arg0: i32) -> (i32, i32) {
    %c0_i32 = arith.constant 0 : i32
    %c0_i32_0 = arith.constant 0 : i32
    %c0_i32_1 = arith.constant 0 : i32
    return %c0_i32, %c0_i32_0 : i32, i32
  }
  func.func @transform_7(%arg0: i32) -> (i32, i32) {
    %c0_i32 = arith.constant 0 : i32
    %c0_i32_0 = arith.constant 0 : i32
    %c0_i32_1 = arith.constant 0 : i32
    return %c0_i32, %c0_i32_0 : i32, i32
  }
  func.func @transform_8(%arg0: i32) -> (i32, i32) {
    %c0_i32 = arith.constant 0 : i32
    %c0_i32_0 = arith.constant 0 : i32
    %c0_i32_1 = arith.constant 0 : i32
    return %c0_i32, %c0_i32_0 : i32, i32
  }
  func.func @transform_9(%arg0: i32) -> (i32, i32) {
    %c0_i32 = arith.constant 0 : i32
    %c0_i32_0 = arith.constant 0 : i32
    %c0_i32_1 = arith.constant 0 : i32
    return %c0_i32, %c0_i32_0 : i32, i32
  }
  func.func @transform_10(%arg0: i32) -> (i32, i32) {
    %c0_i32 = arith.constant 0 : i32
    %c0_i32_0 = arith.constant 0 : i32
    %c0_i32_1 = arith.constant 0 : i32
    return %c0_i32, %c0_i32_0 : i32, i32
  }
  func.func @transform_11(%arg0: i32) -> (i32, i32) {
    %c0_i32 = arith.constant 0 : i32
    %c0_i32_0 = arith.constant 0 : i32
    %c0_i32_1 = arith.constant 0 : i32
    return %c0_i32, %c0_i32_0 : i32, i32
  }
  func.func @transform_12(%arg0: i32) -> (i32, i32) {
    %c0_i32 = arith.constant 0 : i32
    %c0_i32_0 = arith.constant 0 : i32
    %c0_i32_1 = arith.constant 0 : i32
    return %c0_i32, %c0_i32_0 : i32, i32
  }
  func.func @transform_13(%arg0: i32) -> (i32, i32) {
    %c0_i32 = arith.constant 0 : i32
    %c0_i32_0 = arith.constant 0 : i32
    %c0_i32_1 = arith.constant 0 : i32
    return %c0_i32, %c0_i32_0 : i32, i32
  }
  func.func @transform_14(%arg0: i32) -> (i32, i32) {
    %c0_i32 = arith.constant 0 : i32
    %c0_i32_0 = arith.constant 0 : i32
    %c0_i32_1 = arith.constant 0 : i32
    return %c0_i32, %c0_i32_0 : i32, i32
  }
  func.func @transform_15(%arg0: i32) -> (i32, i32) {
    %c0_i32 = arith.constant 0 : i32
    %c0_i32_0 = arith.constant 0 : i32
    %c0_i32_1 = arith.constant 0 : i32
    return %c0_i32, %c0_i32_0 : i32, i32
  }
  func.func @transform_16(%arg0: i32) -> (i32, i32) {
    %c0_i32 = arith.constant 0 : i32
    %c0_i32_0 = arith.constant 0 : i32
    %c0_i32_1 = arith.constant 0 : i32
    return %c0_i32, %c0_i32_0 : i32, i32
  }
  func.func @transform_17(%arg0: i32) -> (i32, i32) {
    %c0_i32 = arith.constant 0 : i32
    %c0_i32_0 = arith.constant 0 : i32
    %c0_i32_1 = arith.constant 0 : i32
    return %c0_i32, %c0_i32_0 : i32, i32
  }
  func.func @transform_18(%arg0: i32) -> (i32, i32) {
    %c0_i32 = arith.constant 0 : i32
    %c0_i32_0 = arith.constant 0 : i32
    %c0_i32_1 = arith.constant 0 : i32
    return %c0_i32, %c0_i32_0 : i32, i32
  }
  func.func @transform_19(%arg0: i32) -> (i32, i32, i32) {
    %c0_i32 = arith.constant 0 : i32
    %c0_i32_0 = arith.constant 0 : i32
    %c0_i32_1 = arith.constant 0 : i32
    %c0_i32_2 = arith.constant 0 : i32
    return %c0_i32, %c0_i32_0, %c0_i32_1 : i32, i32, i32
  }
}

</mosaic_0001>

<bundles_post_ra>
// kernel: decoder_forward.5
= control target key start
LH: loop header
LB: loop body
LE: loop exit
PB: predicated region body
PF: predicated region fallthrough
CT: control target
= control target key end

     0   :  { %7 = vsyncpa [#allocation4], 0  ;;  %s208_s0 = inlined_call_operand.vmem [shape: f32[2], index: 0, kind: input, shape index: {}]   ;;  %s209_s1 = inlined_call_operand.vmem [shape: f32[16,64], index: 1, kind: input, shape index: {}]   ;;  %s210_s2 = inlined_call_operand.hbm [shape: f32[16,64], index: 2, kind: output, shape index: {}]  }
   0x1   :  { %8 = vsyncpa [#allocation3], 0  ;;  %s14_s11 = sshll.u32 %s208_s0, 4  ;;  %s170_s12 = smov [#allocation2]   ;;  %s15_s11 = int_to_ptr.vmem [resolvable:$true] %s14_s11 }
   0x2   :  { %17 = dma.vmem_to_smem %s15_s11, 16, %s170_s12, [#allocation4]  }
   0x3   :  { %166 = dma.done.wait [#allocation4], 16  }
   0x4   :  { %167 = vsyncadd [#allocation4], 4294967280 }
   0x5   :  { %24 = sfence }
   0x6   :  { %v25_v0 = vld [vmem:[%s209_s1] sm:$0xff]  ;;  %vm29_vm0 = vcmask 523264   ;;  %v26_v2 = vld [vmem:[%s209_s1 + $0x8] sm:$0xff]  ;;  %v171_v4 = vmov 64.0   ;;  %s27_s0 = sld [smem:[#allocation2]]  ;;  %s172_s17 = smov [#allocation5]  }
   0x7   :  { %v30_v1 = vsel %vm29_vm0, %v25_v0, 0.0  ;;  %v33_v3 = vsel %vm29_vm0, %v26_v2, 0.0  ;;  %120 = vrcp.f32 %v171_v4  ;;  %s114_s1 = sld [smem:[#allocation2 + $0x1]]  ;;  %s99_s18 = sshll.u32 %s172_s17, 4  ;;  %s100_s18 = int_to_ptr.vmem [resolvable:$true] %s99_s18 }
   0x8   :  { %31 = vadd.xlane.f32.xlu0 %v30_v1  ;;  %s101_s21 = sshll.u32 %s210_s2, 4  ;;  %s173_s22 = smov 128   ;;  %s102_s21 = int_to_ptr.hbm [resolvable:$true] %s101_s21 }
   0x9   :  { %s174_s23 = smov 8  }
   0xc   :  { %v85_v42 = vstv %s27_s0 }
   0xd   :  { %v121_v5 = vpop.eup %120  ;;  %v90_v50 = vstv %s114_s1 }
   0xe   :  { %v37_v6 = vmul.f32 64.0, %v121_v5  ;;  %vm41_vm1 = vweird.f32 %v121_v5 }
  0x10   :  { %34 = vadd.xlane.f32.xlu0 %v33_v3  ;;  %v38_v7 = vsub.f32 1.0, %v37_v6 }
  0x12   :  { %v39_v8 = vmul.f32 %v121_v5, %v38_v7 }
  0x14   :  { %v40_v9 = vadd.f32 %v121_v5, %v39_v8 }
  0x16   :  { %v42_v10 = vsel %vm41_vm1, %v121_v5, %v40_v9 }
  0x7b   :  { %v32_v11 = vpop.xlane.xlu0 %31 }
  0x7c   :  { %v43_v12 = vmul.f32 %v42_v10, %v32_v11 }
  0x7e   :  { %v45_v13 = vsub.f32 %v25_v0, %v43_v12 }
  0x80   :  { %v47_v14 = vmul.f32 %v45_v13, %v45_v13  ;;  %v86_v46 = vmul.f32 %v85_v42, %v45_v13 }
  0x82   :  { %v49_v15 = vsel %vm29_vm0, %v47_v14, 0.0 }
  0x83   :  { %50 = vadd.xlane.f32.xlu1 %v49_v15  ;;  %v35_v16 = vpop.xlane.xlu0 %34 }
  0x84   :  { %v44_v17 = vmul.f32 %v42_v10, %v35_v16 }
  0x86   :  { %v46_v18 = vsub.f32 %v26_v2, %v44_v17 }
  0x88   :  { %v48_v19 = vmul.f32 %v46_v18, %v46_v18  ;;  %v87_v53 = vmul.f32 %v85_v42, %v46_v18 }
  0x8a   :  { %v52_v20 = vsel %vm29_vm0, %v48_v19, 0.0 }
  0x8b   :  { %53 = vadd.xlane.f32.xlu1 %v52_v20 }
  0xf6   :  { %v51_v21 = vpop.xlane.xlu1 %50 }
  0xf7   :  { %v55_v22 = vmul.f32 0.015873017, %v51_v21 }
  0xf9   :  { %122 = vrsqrt.f32 %v55_v22  ;;  %vm64_vm2 = vcmp.eq.f32.partialorder %v55_v22, inf  ;;  %v67_v35 = vand.u32 2147483648, %v55_v22  ;;  %vm66_vm3 = vcmp.eq.f32.partialorder %v55_v22, 0.0 }
  0xfe   :  { %v54_v23 = vpop.xlane.xlu1 %53 }
  0xff   :  { %v123_v24 = vpop.eup %122  ;;  %v56_v25 = vmul.f32 0.015873017, %v54_v23 }
 0x100   :  { %v58_v26 = vmul.f32 %v123_v24, %v55_v22 }
 0x101   :  { %124 = vrsqrt.f32 %v56_v25  ;;  %vm76_vm4 = vcmp.eq.f32.partialorder %v56_v25, inf  ;;  %v79_v44 = vand.u32 2147483648, %v56_v25  ;;  %vm78_vm5 = vcmp.eq.f32.partialorder %v56_v25, 0.0 }
 0x102   :  { %v59_v27 = vmul.f32 %v123_v24, %v58_v26 }
 0x104   :  { %v60_v28 = vmul.f32 0.5, %v59_v27 }
 0x106   :  { %v61_v29 = vsub.f32 1.5, %v60_v28 }
 0x107   :  { %v125_v30 = vpop.eup %124 }
 0x108   :  { %v62_v31 = vmul.f32 %v123_v24, %v61_v29  ;;  %v70_v32 = vmul.f32 %v125_v30, %v56_v25 }
 0x10a   :  { %v63_v33 = vmul.f32 %v62_v31, %v55_v22  ;;  %v71_v34 = vmul.f32 %v125_v30, %v70_v32 }
 0x10c   :  { %v72_v36 = vmul.f32 0.5, %v71_v34  ;;  %v65_v37 = vsel %vm64_vm2, %v55_v22, %v63_v33 }
 0x10d   :  { %v68_v38 = vsel %vm66_vm3, %v67_v35, %v65_v37 }
 0x10e   :  { %v73_v39 = vsub.f32 1.5, %v72_v36  ;;  %v81_v40 = vadd.f32 1e-06, %v68_v38 }
 0x110   :  { %v74_v41 = vmul.f32 %v125_v30, %v73_v39  ;;  %126 = vrcp.f32 %v81_v40 }
 0x112   :  { %v75_v43 = vmul.f32 %v74_v41, %v56_v25 }
 0x114   :  { %v77_v45 = vsel %vm76_vm4, %v56_v25, %v75_v43 }
 0x115   :  { %v80_v47 = vsel %vm78_vm5, %v79_v44, %v77_v45 }
 0x116   :  { %v127_v48 = vpop.eup %126  ;;  %v82_v49 = vadd.f32 1e-06, %v80_v47 }
 0x117   :  { %v88_v51 = vmul.f32 %v127_v48, %v86_v46 }
 0x118   :  { %128 = vrcp.f32 %v82_v49 }
 0x119   :  { %v91_v52 = vadd.f32 %v90_v50, %v88_v51 }
 0x11b   :  { %93 = vst.msk [vmem:[#allocation5] sm:$0xff] %vm29_vm0, %v91_v52 }
 0x11e   :  { %v129_v54 = vpop.eup %128 }
 0x11f   :  { %v89_v55 = vmul.f32 %v129_v54, %v87_v53 }
 0x121   :  { %v92_v56 = vadd.f32 %v90_v50, %v89_v55 }
 0x123   :  { %94 = vst.msk [vmem:[#allocation5 + $0x8] sm:$0xff] %vm29_vm0, %v92_v56 }
 0x124   :  { %107 = dma.vmem_to_hbm [thread:$0]  %s100_s18, 256, %s102_s21, [#allocation3], %s173_s22, %s173_s22, %s174_s23  }
 0x125   :  { %168 = dma.done.wait [#allocation3], 256  }
 0x126   :  { %169 = vsyncadd [#allocation3], 4294967040 }
 0x127   :  { %112 = vsyncpa [#allocation3], 1 }
 0x128   :  { %113 = vsyncpa [#allocation4], 1 }

// kernel: decoder_forward.3
= control target key start
LH: loop header
LB: loop body
LE: loop exit
PB: predicated region body
PF: predicated region fallthrough
CT: control target
= control target key end

     0   :  { %s3037_s0 = inlined_call_operand.vmem [shape: f32[6], index: 0, kind: input, shape index: {}]   ;;  %s3038_s1 = inlined_call_operand.vmem [shape: f32[2,8,64], index: 1, kind: input, shape index: {}]   ;;  %s3039_s2 = inlined_call_operand.vmem [shape: f32[2,16,64], index: 2, kind: input, shape index: {}]   ;;  %s3040_s3 = inlined_call_operand.vmem [shape: f32[2,8,8], index: 3, kind: input, shape index: {}]   ;;  %s3041_s4 = inlined_call_operand.vmem [shape: f32[2,8,16], index: 4, kind: input, shape index: {}]   ;;  %s3042_s5 = inlined_call_operand.vmem [shape: f32[64,192], index: 5, kind: input, shape index: {}]   ;;  %s3043_s6 = inlined_call_operand.vmem [shape: f32[1,192], index: 6, kind: input, shape index: {}]   ;;  %s3044_s7 = inlined_call_operand.vmem [shape: f32[64,64], index: 7, kind: input, shape index: {}]   ;;  %s3045_s8 = inlined_call_operand.vmem [shape: f32[1,64], index: 8, kind: input, shape index: {}]   ;;  %s3046_s9 = inlined_call_operand.hbm [shape: f32[64,64], index: 9, kind: input, shape index: {}]   ;;  %s3047_s10 = inlined_call_operand.vmem [shape: f32[1,64], index: 10, kind: input, shape index: {}]   ;;  %s3048_s11 = inlined_call_operand.hbm [shape: f32[64,128], index: 11, kind: input, shape index: {}]   ;;  %s3049_s12 = inlined_call_operand.vmem [shape: f32[1,128], index: 12, kind: input, shape index: {}]   ;;  %s3050_s13 = inlined_call_operand.hbm [shape: f32[64,64], index: 13, kind: input, shape index: {}]   ;;  %s3051_s14 = inlined_call_operand.vmem [shape: f32[1,64], index: 14, kind: input, shape index: {}]   ;;  %s3052_s15 = inlined_call_operand.hbm [shape: f32[64,128], index: 15, kind: input, shape index: {}]   ;;  %s3053_s16 = inlined_call_operand.vmem [shape: f32[1,128], index: 16, kind: input, shape index: {}]   ;;  %s3054_s17 = inlined_call_operand.vmem [shape: f32[128,64], index: 17, kind: input, shape index: {}]   ;;  %s3055_s18 = inlined_call_operand.vmem [shape: f32[1,64], index: 18, kind: input, shape index: {}]   ;;  %s3056_s19 = inlined_call_operand.vmem [shape: f32[2,8,64], index: 19, kind: output, shape index: {}]  }
   0x1   :  { %3061 = sst [smem:[#allocation15_spill]] %s3037_s0 }
   0x2   :  { %3062 = sst [smem:[#allocation16_spill]] %s3038_s1 }
   0x3   :  { %3063 = sst [smem:[#allocation17_spill]] %s3039_s2 }
   0x4   :  { %3064 = sst [smem:[#allocation18_spill]] %s3040_s3 }
   0x5   :  { %3065 = sst [smem:[#allocation19_spill]] %s3056_s19 }
   0x6   :  { %24 = vsyncpa [#allocation4], 0 }
   0x7   :  { %25 = vsyncpa [#allocation3], 0 }
   0x8   :  { %26 = vsyncpa [#allocation7], 0 }
   0x9   :  { %27 = vsyncpa [#allocation10], 0  ;;  %s72_s20 = sshll.u32 %s3048_s11, 4  ;;  %s2344_s21 = smov [#allocation6]   ;;  %s73_s20 = int_to_ptr.hbm [resolvable:$true] %s72_s20 }
   0xa   :  { %s74_s1 = sshll.u32 %s2344_s21, 4  ;;  %s3066_s23 = sld [smem:[#allocation15_spill]]  ;;  %s75_s1 = int_to_ptr.vmem [resolvable:$true] %s74_s1 }
   0xb   :  { %s2345_s25 = smov 128   ;;  %s2346_s3 = smov 8  }
   0xc   :  { %80 = dma.hbm_to_vmem [thread:$0]  %s73_s20, 1024, %s75_s1, [#allocation7], %s2345_s25, %s2345_s25, %s2346_s3  }
   0xd   :  { %s2347_s26 = smov [#allocation2]   ;;  %s57_s29 = sshll.u32 %s3046_s9, 4  ;;  %s58_s29 = int_to_ptr.hbm [resolvable:$true] %s57_s29 }
   0xe   :  { %s2348_s11 = smov [#allocation5]   ;;  %s87_s19 = sshll.u32 %s3050_s13, 4  ;;  %s88_s19 = int_to_ptr.hbm [resolvable:$true] %s87_s19 }
   0xf   :  { %s59_s0 = sshll.u32 %s2348_s11, 4  ;;  %s2349_s22 = smov [#allocation8]   ;;  %s60_s0 = int_to_ptr.vmem [resolvable:$true] %s59_s0 }
  0x10   :  { %s33_s24 = sshll.u32 %s3066_s23, 4  ;;  %s89_s2 = sshll.u32 %s2349_s22, 4  ;;  %s34_s24 = int_to_ptr.vmem [resolvable:$true] %s33_s24  ;;  %s90_s2 = int_to_ptr.vmem [resolvable:$true] %s89_s2 }
  0x11   :  { %36 = dma.vmem_to_smem %s34_s24, 16, %s2347_s26, [#allocation4]  }
  0x12   :  { %65 = dma.hbm_to_vmem [thread:$0]  %s58_s29, 1024, %s60_s0, [#allocation3], %s2345_s25, %s2345_s25, %s2346_s3  }
  0x13   :  { %s102_s23 = sshll.u32 %s3052_s15, 4  ;;  %s2350_s9 = smov [#allocation9]   ;;  %s103_s23 = int_to_ptr.hbm [resolvable:$true] %s102_s23 }
  0x14   :  { %95 = dma.hbm_to_vmem [thread:$0]  %s88_s19, 1024, %s90_s2, [#allocation7], %s2345_s25, %s2345_s25, %s2346_s3  }
  0x15   :  { %s104_s24 = sshll.u32 %s2350_s9, 4  ;;  %s105_s24 = int_to_ptr.vmem [resolvable:$true] %s104_s24 }
  0x16   :  { %110 = dma.hbm_to_vmem [thread:$0]  %s103_s23, 1024, %s105_s24, [#allocation10], %s2345_s25, %s2345_s25, %s2346_s3  }
  0x17   :  { %2336 = dma.done.wait [#allocation4], 16  }
  0x18   :  { %2337 = vsyncadd [#allocation4], 4294967280 }
  0x19   :  { %2338 = dma.done.wait [#allocation3], 1024  }
  0x1a   :  { %2339 = vsyncadd [#allocation3], 4294966272 }
  0x1b   :  { %2340 = dma.done.wait [#allocation7], 2048  }
  0x1c   :  { %2341 = vsyncadd [#allocation7], 4294965248 }
  0x1d   :  { %2342 = dma.done.wait [#allocation10], 1024  }
  0x1e   :  { %2343 = vsyncadd [#allocation10], 4294966272 }
  0x1f   :  { %137 = sfence }
  0x20   :  { %s3067_s27 = sld [smem:[#allocation16_spill]]  ;;  %vm150_vm0 = vcmask 523264   ;;  %v2351_v4 = vmov 64.0   ;;  %v228_v21 = vld [vmem:[%s3042_s5 + $0x70] sm:$0xff]  ;;  %v229_v22 = vld [vmem:[%s3042_s5 + $0x78] sm:$0xff]  ;;  %v226_v23 = vld [vmem:[%s3042_s5 + $0x60] sm:$0xff] }
  0x21   :  { %2138 = vrcp.f32 %v2351_v4  ;;  %250 = vmatpush.msra.mxu0 %v228_v21  ;;  %273 = vmatpush.msra.mxu1 %v229_v22  ;;  %v227_v24 = vld [vmem:[%s3042_s5 + $0x68] sm:$0xff]  ;;  %v224_v25 = vld [vmem:[%s3042_s5 + $0x50] sm:$0xff]  ;;  %v225_v26 = vld [vmem:[%s3042_s5 + $0x58] sm:$0xff]  ;;  %s148_s23 = sld [smem:[#allocation2]]  ;;  %s2352_s13 = smov 64   ;;  %vm291_vm6 = vcmask 130048  }
  0x22   :  { %v222_v27 = vld [vmem:[%s3042_s5 + $0x40] sm:$0xff]  ;;  %v223_v28 = vld [vmem:[%s3042_s5 + $0x48] sm:$0xff]  ;;  %v220_v29 = vld [vmem:[%s3042_s5 + $0x30] sm:$0xff]  ;;  %vm347_vm7 = vcmask 64512   ;;  %s2353_s25 = smov 48   ;;  %s2354_s3 = smov 112  }
  0x23   :  { %251 = vmatpush.msra.mxu0 %v226_v23  ;;  %274 = vmatpush.msra.mxu1 %v227_v24  ;;  %v221_v30 = vld [vmem:[%s3042_s5 + $0x38] sm:$0xff]  ;;  %v218_v31 = vld [vmem:[%s3042_s5 + $0x20] sm:$0xff]  ;;  %v219_v32 = vld [vmem:[%s3042_s5 + $0x28] sm:$0xff]  ;;  %s2355_s28 = smov 32   ;;  %s2356_s29 = smov 96  }
  0x24   :  { %v216_v33 = vld [vmem:[%s3042_s5 + $0x10] sm:$0xff]  ;;  %v217_v34 = vld [vmem:[%s3042_s5 + $0x18] sm:$0xff]  ;;  %v214_v35 = vld [vmem:[%s3042_s5] sm:$0xff]  ;;  %s2357_s11 = smov 16   ;;  %s2358_s0 = smov 80  }
  0x25   :  { %252 = vmatpush.msra.mxu0 %v224_v25  ;;  %275 = vmatpush.msra.mxu1 %v225_v26  ;;  %v215_v36 = vld [vmem:[%s3042_s5 + $0x8] sm:$0xff]  ;;  %s1988_s5 = sld [smem:[#allocation2 + $0x1]] }
  0x26   :  { %v2477_v0 = vld [vmem:[%s3067_s27] sm:$0xff]  ;;  %v2484_v2 = vld [vmem:[%s3067_s27 + $0x8] sm:$0xff]  ;;  %s3068_s27 = sld [smem:[#allocation18_spill]] }
  0x27   :  { %v151_v1 = vsel %vm150_vm0, %v2477_v0, 0.0  ;;  %v154_v3 = vsel %vm150_vm0, %v2484_v2, 0.0  ;;  %v2139_v5 = vpop.eup %2138  ;;  %253 = vmatpush.msra.mxu0 %v222_v27  ;;  %276 = vmatpush.msra.mxu1 %v223_v28  ;;  %v206_v59 = vstv %s148_s23  ;;  %s3069_s2 = sld [smem:[#allocation17_spill]] }
  0x28   :  { %152 = vadd.xlane.f32.xlu0 %v151_v1  ;;  %v158_v6 = vmul.f32 64.0, %v2139_v5  ;;  %vm162_vm1 = vweird.f32 %v2139_v5  ;;  %s2734_s23 = sld [smem:[#allocation2 + $0x2]] }
  0x29   :  { %254 = vmatpush.msra.mxu0 %v220_v29  ;;  %277 = vmatpush.msra.mxu1 %v221_v30 }
  0x2a   :  { %v159_v7 = vsub.f32 1.0, %v158_v6 }
  0x2b   :  { %255 = vmatpush.msra.mxu0 %v218_v31  ;;  %278 = vmatpush.msra.mxu1 %v219_v32 }
  0x2c   :  { %v160_v8 = vmul.f32 %v2139_v5, %v159_v7  ;;  %v2584_v26 = vld [vmem:[%s3068_s27] sm:$0xff]  ;;  %v2591_v31 = vld [vmem:[%s3068_s27 + $0x8] sm:$0xff] }
  0x2d   :  { %256 = vmatpush.msra.mxu0 %v216_v33  ;;  %279 = vmatpush.msra.mxu1 %v217_v34 }
  0x2e   :  { %v161_v9 = vadd.f32 %v2139_v5, %v160_v8 }
  0x2f   :  { %257 = vmatpush.msra.mxu0 %v214_v35  ;;  %280 = vmatpush.msra.mxu1 %v215_v36 }
  0x30   :  { %155 = vadd.xlane.f32.xlu0 %v154_v3  ;;  %v2488_v10 = vsel %vm162_vm1, %v2139_v5, %v161_v9  ;;  %v211_v3 = vstv %s1988_s5  ;;  %s2736_s5 = sld [smem:[#allocation2 + $0x3]] }
  0x9b   :  { %v153_v11 = vpop.xlane.xlu0 %152 }
  0x9c   :  { %v164_v12 = vmul.f32 %v2488_v10, %v153_v11 }
  0x9e   :  { %v2492_v13 = vsub.f32 %v2477_v0, %v164_v12  ;;  %v230_v12 = vld [vmem:[%s3043_s6] sm:$0x3] }
  0xa0   :  { %v168_v14 = vmul.f32 %v2492_v13, %v2492_v13  ;;  %v207_v62 = vmul.f32 %v206_v59, %v2492_v13  ;;  %v232_v13 = vperm.slane %v230_v12, 0 }
  0xa2   :  { %v170_v15 = vsel %vm150_vm0, %v168_v14, 0.0  ;;  %v233_v14 = vperm.slane %v230_v12, 1 }
  0xa3   :  { %171 = vadd.xlane.f32.xlu1 %v170_v15  ;;  %v156_v16 = vpop.xlane.xlu0 %155 }
  0xa4   :  { %v165_v17 = vmul.f32 %v2488_v10, %v156_v16 }
  0xa6   :  { %v2499_v18 = vsub.f32 %v2484_v2, %v165_v17 }
  0xa8   :  { %v169_v19 = vmul.f32 %v2499_v18, %v2499_v18  ;;  %v208_v7 = vmul.f32 %v206_v59, %v2499_v18 }
  0xaa   :  { %v173_v20 = vsel %vm150_vm0, %v169_v19, 0.0 }
  0xab   :  { %174 = vadd.xlane.f32.xlu1 %v173_v20 }
 0x116   :  { %v172_v37 = vpop.xlane.xlu1 %171 }
 0x117   :  { %v176_v38 = vmul.f32 0.015873017, %v172_v37 }
 0x119   :  { %2140 = vrsqrt.f32 %v176_v38  ;;  %vm185_vm2 = vcmp.eq.f32.partialorder %v176_v38, inf  ;;  %v188_v51 = vand.u32 2147483648, %v176_v38  ;;  %vm187_vm3 = vcmp.eq.f32.partialorder %v176_v38, 0.0 }
 0x11e   :  { %v175_v39 = vpop.xlane.xlu1 %174 }
 0x11f   :  { %v2141_v40 = vpop.eup %2140  ;;  %v177_v41 = vmul.f32 0.015873017, %v175_v39 }
 0x120   :  { %v179_v42 = vmul.f32 %v2141_v40, %v176_v38 }
 0x121   :  { %2142 = vrsqrt.f32 %v177_v41  ;;  %vm197_vm4 = vcmp.eq.f32.partialorder %v177_v41, inf  ;;  %v200_v58 = vand.u32 2147483648, %v177_v41  ;;  %vm199_vm5 = vcmp.eq.f32.partialorder %v177_v41, 0.0 }
 0x122   :  { %v180_v43 = vmul.f32 %v2141_v40, %v179_v42 }
 0x124   :  { %v181_v44 = vmul.f32 0.5, %v180_v43 }
 0x126   :  { %v182_v45 = vsub.f32 1.5, %v181_v44 }
 0x127   :  { %v2143_v46 = vpop.eup %2142 }
 0x128   :  { %v191_v47 = vmul.f32 %v2143_v46, %v177_v41  ;;  %v183_v48 = vmul.f32 %v2141_v40, %v182_v45 }
 0x12a   :  { %v184_v49 = vmul.f32 %v183_v48, %v176_v38  ;;  %v192_v50 = vmul.f32 %v2143_v46, %v191_v47 }
 0x12c   :  { %v186_v52 = vsel %vm185_vm2, %v176_v38, %v184_v49  ;;  %v193_v53 = vmul.f32 0.5, %v192_v50 }
 0x12d   :  { %v189_v54 = vsel %vm187_vm3, %v188_v51, %v186_v52  ;;  %v417_v52 = vld [vmem:[%s3044_s7 + $0x8] sm:$0xff] }
 0x12e   :  { %v202_v55 = vadd.f32 1e-06, %v189_v54  ;;  %v194_v56 = vsub.f32 1.5, %v193_v53  ;;  %v416_v53 = vld [vmem:[%s3044_s7] sm:$0xff] }
 0x130   :  { %2144 = vrcp.f32 %v202_v55  ;;  %v195_v57 = vmul.f32 %v2143_v46, %v194_v56 }
 0x132   :  { %v196_v60 = vmul.f32 %v195_v57, %v177_v41 }
 0x134   :  { %v198_v61 = vsel %vm197_vm4, %v177_v41, %v196_v60 }
 0x135   :  { %v201_v63 = vsel %vm199_vm5, %v200_v58, %v198_v61 }
 0x136   :  { %v2145_v1 = vpop.eup %2144  ;;  %v203_v4 = vadd.f32 1e-06, %v201_v63 }
 0x137   :  { %v209_v5 = vmul.f32 %v2145_v1, %v207_v62 }
 0x138   :  { %2146 = vrcp.f32 %v203_v4 }
 0x139   :  { %v212_v6 = vadd.f32 %v211_v3, %v209_v5 }
 0x13b   :  { %1989 = vmatmul.msk.f32.vlgmr.msra.gmra.mxu0 %vm150_vm0, %v212_v6  ;;  %1991 = vmatmul.msk.f32.vlgmr.msra.gmra.mxu1 %vm150_vm0, %v212_v6 }
 0x13e   :  { %v2147_v8 = vpop.eup %2146 }
 0x13f   :  { %v210_v9 = vmul.f32 %v2147_v8, %v208_v7 }
 0x141   :  { %v213_v11 = vadd.f32 %v211_v3, %v210_v9 }
 0x143   :  { %1990 = vmatmul.msk.f32.gmra.mxu0 %vm150_vm0, %v213_v11  ;;  %1992 = vmatmul.msk.f32.gmra.mxu1 %vm150_vm0, %v213_v11 }
 0x1b8   :  { %v259_v15 = vpop.f32.mrf.mxu0  ;;  %v282_v16 = vpop.f32.mrf.mxu1 }
 0x1b9   :  { %v2561_v17 = vadd.f32 %v259_v15, %v232_v13  ;;  %v2563_v19 = vadd.f32 %v282_v16, %v233_v14 }
 0x1bb   :  { %388 = vmatpush.msra.mxu2 %v2563_v19  ;;  %289 = vrot.lane.b32.xlu2 %v2561_v17, %s2352_s13 }
 0x1c0   :  { %v262_v18 = vpop.f32.mrf.mxu0  ;;  %v285_v22 = vpop.f32.mrf.mxu1 }
 0x1c1   :  { %v2568_v20 = vadd.f32 %v262_v18, %v232_v13  ;;  %v2575_v23 = vadd.f32 %v285_v22, %v233_v14 }
 0x1c3   :  { %317 = vrot.lane.b32.xlu2 %v2568_v20, %s2352_s13 }
 0x215   :  { %v290_v21 = vpop.permute.xlu2 %289 }
 0x216   :  { %1993 = vmatpush.xpose.msk.msrb.mxu1 %vm291_vm6, %v290_v21 }
 0x219   :  { %1994 = vmatmul.msk.f32.vlgmr.msrb.gmra.mxu1 %vm291_vm6, %v2561_v17 }
 0x21a   :  { %605 = vmatpush.msra.mxu1 %v417_v52 }
 0x21c   :  { %606 = vmatpush.msra.mxu1 %v416_v53 }
 0x21d   :  { %v318_v24 = vpop.permute.xlu2 %317 }
 0x21e   :  { %1995 = vmatpush.xpose.msk.msra.mxu3 %vm291_vm6, %v318_v24 }
 0x221   :  { %1996 = vmatmul.msk.f32.vlgmr.msra.gmra.mxu3 %vm291_vm6, %v2568_v20 }
 0x222   :  { %411 = vmatpush.msrb.mxu3 %v2575_v23 }
 0x296   :  { %v313_v25 = vpop.f32.mrf.mxu1 }
 0x297   :  { %v343_v27 = vmul.f32 0.25, %v313_v25 }
 0x299   :  { %v345_v28 = vadd.f32 %v343_v27, %v2584_v26 }
 0x29b   :  { %v348_v29 = vsel %vm347_vm7, %v345_v28, -inf }
 0x29c   :  { %349 = vmax.xlane.f32.xlu0 %v348_v29 }
 0x2a4   :  { %v340_v30 = vpop.f32.mrf.mxu3 }
 0x2a5   :  { %v344_v32 = vmul.f32 0.25, %v340_v30 }
 0x2a7   :  { %v346_v33 = vadd.f32 %v344_v32, %v2591_v31 }
 0x2a9   :  { %v351_v34 = vsel %vm347_vm7, %v346_v33, -inf }
 0x2aa   :  { %352 = vmax.xlane.f32.xlu1 %v351_v34 }
 0x2b0   :  { %420 = vrot.lane.b32.xlu0 %v2561_v17, %s2353_s25 }
 0x2c3   :  { %418 = vrot.lane.b32.xlu1 %v2561_v17, %s2354_s3 }
 0x2cb   :  { %448 = vrot.lane.b32.xlu1 %v2568_v20, %s2353_s25 }
 0x2d3   :  { %446 = vrot.lane.b32.xlu1 %v2568_v20, %s2354_s3 }
 0x30f   :  { %v350_v35 = vpop.xlane.xlu0 %349 }
 0x310   :  { %v354_v36 = vsub.f32 %v345_v28, %v350_v35 }
 0x312   :  { %v356_v37 = vmul.f32 1.442695, %v354_v36 }
 0x314   :  { %2148 = vpow2.f32 %v356_v37 }
 0x31a   :  { %v2149_v38 = vpop.eup %2148 }
 0x31b   :  { %v360_v39 = vsel %vm347_vm7, %v2149_v38, 0.0 }
 0x31c   :  { %361 = vadd.xlane.f32.xlu2 %v360_v39 }
 0x31d   :  { %v353_v40 = vpop.xlane.xlu1 %352 }
 0x31e   :  { %v355_v41 = vsub.f32 %v346_v33, %v353_v40 }
 0x320   :  { %v358_v42 = vmul.f32 1.442695, %v355_v41 }
 0x322   :  { %2150 = vpow2.f32 %v358_v42  ;;  %v421_v43 = vpop.permute.xlu0 %420  ;;  %v554_v42 = vld [vmem:[%s3044_s7 + $0x10] sm:$0xff] }
 0x323   :  { %1999 = vmatpush.xpose.msk.msrb.mxu2 %vm291_vm6, %v421_v43 }
 0x328   :  { %v2151_v44 = vpop.eup %2150 }
 0x329   :  { %v363_v45 = vsel %vm347_vm7, %v2151_v44, 0.0 }
 0x32a   :  { %364 = vadd.xlane.f32.xlu0 %v363_v45 }
 0x335   :  { %v419_v46 = vpop.permute.xlu1 %418 }
 0x33d   :  { %v449_v47 = vpop.permute.xlu1 %448 }
 0x33e   :  { %616 = vrot.lane.b32.xlu0 %v2561_v17, %s2355_s28  ;;  %2001 = vmatpush.xpose.msk.msra.mxu3 %vm291_vm6, %v449_v47 }
 0x345   :  { %v447_v56 = vpop.permute.xlu1 %446 }
 0x346   :  { %528 = vrot.lane.b32.xlu0 %v2575_v23, %s2354_s3 }
 0x34e   :  { %642 = vrot.lane.b32.xlu0 %v2568_v20, %s2356_s29 }
 0x356   :  { %783 = vrot.lane.b32.xlu0 %v2561_v17, %s2357_s11 }
 0x35e   :  { %781 = vrot.lane.b32.xlu0 %v2561_v17, %s2358_s0 }
 0x38f   :  { %v362_v48 = vpop.xlane.xlu2 %361 }
 0x390   :  { %2152 = vrcp.f32 %v362_v48 }
 0x396   :  { %v2153_v49 = vpop.eup %2152 }
 0x397   :  { %v368_v50 = vmul.f32 %v2153_v49, %v2149_v38  ;;  %v555_v38 = vld [vmem:[%s3044_s7 + $0x18] sm:$0xff] }
 0x398   :  { %576 = vmatpush.msrb.mxu0 %v555_v38 }
 0x399   :  { %1997 = vmatmul.msk.f32.vlgmr.msra.gmra.mxu2 %vm347_vm7, %v368_v50 }
 0x39a   :  { %577 = vmatpush.msrb.mxu0 %v554_v42 }
 0x39d   :  { %v365_v51 = vpop.xlane.xlu0 %364 }
 0x39e   :  { %2154 = vrcp.f32 %v365_v51 }
 0x3a1   :  { %2000 = vmatmul.msk.f32.vlgmr.msrb.gmra.mxu2 %vm291_vm6, %v419_v46 }
 0x3a4   :  { %v2155_v54 = vpop.eup %2154 }
 0x3a5   :  { %v369_v55 = vmul.f32 %v2155_v54, %v2151_v44 }
 0x3a7   :  { %1998 = vmatmul.msk.f32.vlgmr.msrb.gmra.mxu3 %vm347_vm7, %v369_v55 }
 0x3af   :  { %2002 = vmatmul.msk.f32.vlgmr.msra.gmra.mxu3 %vm291_vm6, %v447_v56 }
 0x3b0   :  { %v617_v57 = vpop.permute.xlu0 %616 }
 0x3b8   :  { %v529_v58 = vpop.permute.xlu0 %528 }
 0x3b9   :  { %549 = vmatpush.msrb.mxu3 %v529_v58 }
 0x3c0   :  { %v643_v59 = vpop.permute.xlu0 %642 }
 0x3c8   :  { %v784_v60 = vpop.permute.xlu0 %783 }
 0x3c9   :  { %2017 = vmatpush.xpose.msk.msrb.mxu1 %vm291_vm6, %v784_v60 }
 0x3d0   :  { %v782_v5 = vpop.permute.xlu0 %781 }
 0x41c   :  { %v390_v61 = vpop.f32.mrf.mxu2 }
 0x41d   :  { %2007 = vmatmul.msk.f32.vlgmr.msra.gmra.mxu1 %vm291_vm6, %v390_v61 }
 0x424   :  { %v443_v62 = vpop.f32.mrf.mxu2 }
 0x425   :  { %v474_v63 = vmul.f32 0.25, %v443_v62 }
 0x427   :  { %v476_v1 = vadd.f32 %v474_v63, %v2584_v26 }
 0x429   :  { %v478_v3 = vsel %vm347_vm7, %v476_v1, -inf }
 0x42a   :  { %v413_v4 = vpop.f32.mrf.mxu3  ;;  %479 = vmax.xlane.f32.xlu2 %v478_v3 }
 0x42b   :  { %2008 = vmatmul.msk.f32.gmra.mxu1 %vm291_vm6, %v413_v4 }
 0x432   :  { %v471_v6 = vpop.f32.mrf.mxu3 }
 0x433   :  { %v475_v7 = vmul.f32 0.25, %v471_v6  ;;  %2018 = vmatmul.msk.f32.vlgmr.msrb.gmra.mxu1 %vm291_vm6, %v782_v5 }
 0x435   :  { %v477_v8 = vadd.f32 %v475_v7, %v2591_v31 }
 0x437   :  { %v481_v9 = vsel %vm347_vm7, %v477_v8, -inf }
 0x438   :  { %482 = vmax.xlane.f32.xlu1 %v481_v9 }
 0x442   :  { %501 = vrot.lane.b32.xlu2 %v2563_v19, %s2354_s3 }
 0x451   :  { %644 = vrot.lane.b32.xlu1 %v2568_v20, %s2355_s28 }
 0x49a   :  { %v2644_v22 = vpop.f32.mrf.mxu1 }
 0x49d   :  { %v480_v11 = vpop.xlane.xlu2 %479 }
 0x49e   :  { %v484_v12 = vsub.f32 %v476_v1, %v480_v11 }
 0x4a0   :  { %v486_v13 = vmul.f32 1.442695, %v484_v12  ;;  %v749_v12 = vld [vmem:[%s3044_s7 + $0x28] sm:$0xff] }
 0x4a1   :  { %770 = vmatpush.msra.mxu0 %v749_v12 }
 0x4a2   :  { %2156 = vpow2.f32 %v486_v13 }
 0x4a5   :  { %v502_v14 = vpop.permute.xlu2 %501 }
 0x4a6   :  { %522 = vmatpush.msra.mxu2 %v502_v14 }
 0x4a8   :  { %2009 = vmatpush.xpose.msk.msrb.mxu2 %vm291_vm6, %v617_v57  ;;  %v2157_v15 = vpop.eup %2156  ;;  %v2646_v25 = vpop.f32.mrf.mxu1 }
 0x4a9   :  { %v490_v16 = vsel %vm347_vm7, %v2157_v15, 0.0 }
 0x4aa   :  { %491 = vadd.xlane.f32.xlu2 %v490_v16 }
 0x4ab   :  { %v483_v18 = vpop.xlane.xlu1 %482 }
 0x4ac   :  { %v485_v24 = vsub.f32 %v477_v8, %v483_v18 }
 0x4ae   :  { %v488_v27 = vmul.f32 1.442695, %v485_v24  ;;  %v748_v24 = vld [vmem:[%s3044_s7 + $0x20] sm:$0xff] }
 0x4af   :  { %771 = vmatpush.msra.mxu0 %v748_v24 }
 0x4b0   :  { %2158 = vpow2.f32 %v488_v27  ;;  %v806_v29 = vpop.f32.mrf.mxu1 }
 0x4b1   :  { %v837_v30 = vmul.f32 0.25, %v806_v29 }
 0x4b3   :  { %v839_v33 = vadd.f32 %v837_v30, %v2584_v26 }
 0x4b6   :  { %v2159_v28 = vpop.eup %2158 }
 0x4b7   :  { %v493_v32 = vsel %vm347_vm7, %v2159_v28, 0.0 }
 0x4c2   :  { %614 = vrot.lane.b32.xlu2 %v2561_v17, %s2356_s29  ;;  %v841_v17 = vsel %vm347_vm7, %v839_v33, -inf }
 0x4c3   :  { %v645_v21 = vpop.permute.xlu1 %644 }
 0x4c4   :  { %2011 = vmatpush.xpose.msk.msra.mxu3 %vm291_vm6, %v645_v21 }
 0x4eb   :  { %494 = vadd.xlane.f32.xlu2 %v493_v32 }
 0x4f3   :  { %842 = vmax.xlane.f32.xlu2 %v841_v17  ;;  %v915_v17 = vld [vmem:[%s3044_s7 + $0x30] sm:$0xff] }
 0x51d   :  { %v492_v34 = vpop.xlane.xlu2 %491 }
 0x51e   :  { %2160 = vrcp.f32 %v492_v34 }
 0x524   :  { %v2161_v35 = vpop.eup %2160 }
 0x525   :  { %v498_v36 = vmul.f32 %v2161_v35, %v2157_v15  ;;  %v615_v37 = vpop.permute.xlu2 %614 }
 0x527   :  { %2003 = vmatmul.msk.f32.vlgmr.msra.gmra.mxu2 %vm347_vm7, %v498_v36 }
 0x52f   :  { %2010 = vmatmul.msk.f32.vlgmr.msrb.gmra.mxu2 %vm291_vm6, %v615_v37 }
 0x55e   :  { %v495_v39 = vpop.xlane.xlu2 %494 }
 0x55f   :  { %2162 = vrcp.f32 %v495_v39 }
 0x565   :  { %v2163_v40 = vpop.eup %2162 }
 0x566   :  { %v499_v41 = vmul.f32 %v2163_v40, %v2159_v28  ;;  %v843_v48 = vpop.xlane.xlu2 %842 }
 0x567   :  { %v847_v49 = vsub.f32 %v839_v33, %v843_v48  ;;  %v916_v33 = vld [vmem:[%s3044_s7 + $0x38] sm:$0xff] }
 0x568   :  { %2004 = vmatmul.msk.f32.vlgmr.msrb.gmra.mxu3 %vm347_vm7, %v499_v41 }
 0x569   :  { %v849_v51 = vmul.f32 1.442695, %v847_v49 }
 0x56b   :  { %2164 = vpow2.f32 %v849_v51 }
 0x570   :  { %2012 = vmatmul.msk.f32.vlgmr.msra.gmra.mxu3 %vm291_vm6, %v643_v59 }
 0x571   :  { %v2165_v55 = vpop.eup %2164 }
 0x572   :  { %v853_v56 = vsel %vm347_vm7, %v2165_v55, 0.0 }
 0x5aa   :  { %v524_v43 = vpop.f32.mrf.mxu2 }
 0x5ab   :  { %2005 = vmatmul.msk.f32.vlgmr.msrb.gmra.mxu0 %vm291_vm6, %v524_v43 }
 0x5ac   :  { %937 = vmatpush.msrb.mxu0 %v916_v33 }
 0x5ae   :  { %938 = vmatpush.msrb.mxu0 %v915_v17  ;;  %v1006_v17 = vstv %s2734_s23 }
 0x5b2   :  { %v639_v44 = vpop.f32.mrf.mxu2 }
 0x5b3   :  { %v670_v45 = vmul.f32 0.25, %v639_v44 }
 0x5b5   :  { %v672_v46 = vadd.f32 %v670_v45, %v2584_v26 }
 0x5b7   :  { %v674_v47 = vsel %vm347_vm7, %v672_v46, -inf }
 0x5b8   :  { %675 = vmax.xlane.f32.xlu1 %v674_v47 }
 0x5d1   :  { %811 = vrot.lane.b32.xlu1 %v2568_v20, %s2357_s11 }
 0x5eb   :  { %v551_v50 = vpop.f32.mrf.mxu3 }
 0x5ec   :  { %2006 = vmatmul.msk.f32.gmra.mxu0 %vm291_vm6, %v551_v50 }
 0x5f3   :  { %v667_v52 = vpop.f32.mrf.mxu3 }
 0x5f4   :  { %v671_v53 = vmul.f32 0.25, %v667_v52 }
 0x5f6   :  { %v673_v54 = vadd.f32 %v671_v53, %v2591_v31 }
 0x5f8   :  { %v677_v26 = vsel %vm347_vm7, %v673_v54, -inf }
 0x5f9   :  { %678 = vmax.xlane.f32.xlu0 %v677_v26 }
 0x5fb   :  { %854 = vadd.xlane.f32.xlu1 %v853_v56 }
 0x60d   :  { %809 = vrot.lane.b32.xlu0 %v2568_v20, %s2358_s0 }
 0x615   :  { %722 = vrot.lane.b32.xlu0 %v2575_v23, %s2356_s29 }
 0x61d   :  { %863 = vrot.lane.b32.xlu0 %v2563_v19, %s2358_s0 }
 0x628   :  { %v579_v40 = vpop.f32.mrf.mxu0 }
 0x629   :  { %v609_v44 = vadd.f32 %v2644_v22, %v579_v40 }
 0x62b   :  { %v676_v57 = vpop.xlane.xlu1 %675 }
 0x62c   :  { %v680_v58 = vsub.f32 %v672_v46, %v676_v57  ;;  %v2713_v46 = vld [vmem:[%s3045_s8] ss:$0 sm:$0xff] }
 0x62e   :  { %v682_v59 = vmul.f32 1.442695, %v680_v58  ;;  %v1062_v58 = vld [vmem:[#allocation6 + $0x38] sm:$0xff] }
 0x630   :  { %2166 = vpow2.f32 %v682_v59  ;;  %v1061_v59 = vld [vmem:[#allocation6 + $0x30] sm:$0xff] }
 0x636   :  { %v2167_v60 = vpop.eup %2166 }
 0x637   :  { %v686_v61 = vsel %vm347_vm7, %v2167_v60, 0.0 }
 0x638   :  { %687 = vadd.xlane.f32.xlu2 %v686_v61  ;;  %v1059_v61 = vld [vmem:[#allocation6 + $0x20] sm:$0xff] }
 0x650   :  { %696 = vrot.lane.b32.xlu2 %v2563_v19, %s2356_s29  ;;  %v812_v19 = vpop.permute.xlu1 %811 }
 0x669   :  { %v2705_v41 = vpop.f32.mrf.mxu0 }
 0x66c   :  { %v679_v62 = vpop.xlane.xlu0 %678 }
 0x66d   :  { %v681_v63 = vsub.f32 %v673_v54, %v679_v62  ;;  %v1058_v62 = vld [vmem:[#allocation6 + $0x18] sm:$0xff] }
 0x66e   :  { %v855_v14 = vpop.xlane.xlu1 %854 }
 0x66f   :  { %v684_v20 = vmul.f32 1.442695, %v681_v63  ;;  %v1057_v63 = vld [vmem:[#allocation6 + $0x10] sm:$0xff] }
 0x671   :  { %2168 = vpow2.f32 %v684_v20  ;;  %v1056_v20 = vld [vmem:[#allocation6 + $0x8] sm:$0xff] }
 0x677   :  { %v2169_v1 = vpop.eup %2168 }
 0x678   :  { %v689_v3 = vsel %vm347_vm7, %v2169_v1, 0.0 }
 0x679   :  { %690 = vadd.xlane.f32.xlu2 %v689_v3  ;;  %v140_v3 = vld [vmem:[%s3069_s2] sm:$0xff] }
 0x67f   :  { %v810_v4 = vpop.permute.xlu0 %809 }
 0x687   :  { %v723_v5 = vpop.permute.xlu0 %722 }
 0x688   :  { %743 = vmatpush.msrb.mxu3 %v723_v5  ;;  %v1020_v5 = vld [vmem:[#allocation5 + $0x30] sm:$0xff] }
 0x68f   :  { %v864_v6 = vpop.permute.xlu0 %863 }
 0x690   :  { %884 = vmatpush.msra.mxu3 %v864_v6  ;;  %v141_v6 = vld [vmem:[%s3069_s2 + $0x8] sm:$0xff] }
 0x6ab   :  { %v688_v7 = vpop.xlane.xlu2 %687 }
 0x6ac   :  { %2170 = vrcp.f32 %v688_v7  ;;  %v1019_v7 = vld [vmem:[#allocation5 + $0x28] sm:$0xff] }
 0x6b2   :  { %v2171_v8 = vpop.eup %2170 }
 0x6b3   :  { %v694_v9 = vmul.f32 %v2171_v8, %v2167_v60  ;;  %v697_v11 = vpop.permute.xlu2 %696  ;;  %v1060_v60 = vld [vmem:[#allocation6 + $0x28] sm:$0xff]  ;;  %v1018_v8 = vld [vmem:[#allocation5 + $0x20] sm:$0xff] }
 0x6b4   :  { %717 = vmatpush.msra.mxu2 %v697_v11  ;;  %v1016_v11 = vld [vmem:[#allocation5 + $0x10] sm:$0xff] }
 0x6b5   :  { %2013 = vmatmul.msk.f32.vlgmr.msra.gmra.mxu2 %vm347_vm7, %v694_v9  ;;  %v1017_v9 = vld [vmem:[#allocation5 + $0x18] sm:$0xff] }
 0x6b6   :  { %2019 = vmatpush.xpose.msk.msrb.mxu2 %vm291_vm6, %v812_v19  ;;  %v1015_v19 = vld [vmem:[#allocation5 + $0x8] sm:$0xff] }
 0x6bd   :  { %2020 = vmatmul.msk.f32.vlgmr.msrb.gmra.mxu2 %vm291_vm6, %v810_v4  ;;  %v1021_v4 = vld [vmem:[#allocation5 + $0x38] sm:$0xff] }
 0x6ec   :  { %v691_v13 = vpop.xlane.xlu2 %690 }
 0x6ed   :  { %2172 = vrcp.f32 %v691_v13  ;;  %v1014_v13 = vld [vmem:[#allocation5] sm:$0xff] }
 0x6ee   :  { %2174 = vrcp.f32 %v855_v14 }
 0x6f3   :  { %v2173_v15 = vpop.eup %2172 }
 0x6f4   :  { %v695_v16 = vmul.f32 %v2173_v15, %v2169_v1  ;;  %v2175_v18 = vpop.eup %2174  ;;  %v1055_v1 = vld [vmem:[#allocation6] sm:$0xff] }
 0x6f5   :  { %v861_v21 = vmul.f32 %v2175_v18, %v2165_v55 }
 0x6f6   :  { %2014 = vmatmul.msk.f32.vlgmr.msrb.gmra.mxu3 %vm347_vm7, %v695_v16 }
 0x6f7   :  { %1087 = vmatpush.msrb.mxu3 %v1062_v58 }
 0x6f9   :  { %1088 = vmatpush.msrb.mxu3 %v1061_v59  ;;  %v2799_v59 = vld [vmem:[%s3041_s4] sm:$0xff] }
 0x6fb   :  { %1089 = vmatpush.msrb.mxu3 %v1060_v60 }
 0x6fd   :  { %1090 = vmatpush.msrb.mxu3 %v1059_v61 }
 0x6fe   :  { %2021 = vmatmul.msk.f32.vlgmr.msra.gmra.mxu3 %vm347_vm7, %v861_v21 }
 0x6ff   :  { %1091 = vmatpush.msrb.mxu3 %v1058_v62 }
 0x701   :  { %1092 = vmatpush.msrb.mxu3 %v1057_v63 }
 0x703   :  { %1093 = vmatpush.msrb.mxu3 %v1056_v20 }
 0x705   :  { %1094 = vmatpush.msrb.mxu3 %v1055_v1 }
 0x706   :  { %2029 = vmatmul.msk.f32.vlgmr.msrb.gmra.mxu3 %vm150_vm0, %v140_v3 }
 0x70e   :  { %2030 = vmatmul.msk.f32.gmra.mxu3 %vm150_vm0, %v141_v6 }
 0x738   :  { %v719_v27 = vpop.f32.mrf.mxu2 }
 0x739   :  { %2015 = vmatmul.msk.f32.vlgmr.msra.gmra.mxu0 %vm291_vm6, %v719_v27 }
 0x73a   :  { %1040 = vmatpush.msra.mxu0 %v1021_v4 }
 0x73c   :  { %1041 = vmatpush.msra.mxu0 %v1020_v5 }
 0x73e   :  { %1042 = vmatpush.msra.mxu0 %v1019_v7 }
 0x740   :  { %v834_v28 = vpop.f32.mrf.mxu2  ;;  %1043 = vmatpush.msra.mxu0 %v1018_v8 }
 0x741   :  { %v838_v29 = vmul.f32 0.25, %v834_v28 }
 0x742   :  { %1044 = vmatpush.msra.mxu0 %v1017_v9 }
 0x743   :  { %v840_v30 = vadd.f32 %v838_v29, %v2591_v31 }
 0x744   :  { %1045 = vmatpush.msra.mxu0 %v1016_v11 }
 0x745   :  { %v844_v32 = vsel %vm347_vm7, %v840_v30, -inf }
 0x746   :  { %845 = vmax.xlane.f32.xlu0 %v844_v32  ;;  %1046 = vmatpush.msra.mxu0 %v1015_v19 }
 0x748   :  { %1047 = vmatpush.msra.mxu0 %v1014_v13 }
 0x779   :  { %v745_v34 = vpop.f32.mrf.mxu3 }
 0x77a   :  { %2016 = vmatmul.msk.f32.gmra.mxu0 %vm291_vm6, %v745_v34 }
 0x781   :  { %v886_v35 = vpop.f32.mrf.mxu3 }
 0x782   :  { %2023 = vmatmul.msk.f32.vlgmr.msrb.gmra.mxu0 %vm291_vm6, %v886_v35 }
 0x7b6   :  { %v773_v42 = vpop.f32.mrf.mxu0 }
 0x7b7   :  { %v779_v45 = vadd.f32 %v773_v42, %v609_v44 }
 0x7b9   :  { %v846_v31 = vpop.xlane.xlu0 %845 }
 0x7ba   :  { %v848_v36 = vsub.f32 %v840_v30, %v846_v31  ;;  %v1011_v31 = vstv %s2736_s5 }
 0x7bc   :  { %v851_v37 = vmul.f32 1.442695, %v848_v36 }
 0x7be   :  { %2176 = vpow2.f32 %v851_v37 }
 0x7c4   :  { %v2177_v38 = vpop.eup %2176 }
 0x7c5   :  { %v856_v39 = vsel %vm347_vm7, %v2177_v38, 0.0 }
 0x7c6   :  { %857 = vadd.xlane.f32.xlu2 %v856_v39 }
 0x7de   :  { %889 = vrot.lane.b32.xlu2 %v2575_v23, %s2358_s0 }
 0x7f7   :  { %v2707_v43 = vpop.f32.mrf.mxu0 }
 0x7ff   :  { %v940_v47 = vpop.f32.mrf.mxu0 }
 0x800   :  { %v946_v48 = vadd.f32 %v940_v47, %v779_v45 }
 0x802   :  { %v952_v49 = vadd.f32 %v2713_v46, %v946_v48  ;;  %v1096_v48 = vpop.f32.mrf.mxu3 }
 0x804   :  { %v2717_v23 = vadd.f32 %v952_v49, %v2477_v0  ;;  %v2133_v49 = vld [vmem:[%s3049_s12] ss:$0 sm:$0xff] }
 0x806   :  { %v958_v50 = vsel %vm150_vm0, %v2717_v23, 0.0 }
 0x807   :  { %959 = vadd.xlane.f32.xlu1 %v958_v50 }
 0x80a   :  { %v1099_v50 = vpop.f32.mrf.mxu3 }
 0x839   :  { %v858_v51 = vpop.xlane.xlu2 %857 }
 0x83a   :  { %2178 = vrcp.f32 %v858_v51 }
 0x840   :  { %v2179_v22 = vpop.eup %2178 }
 0x841   :  { %v862_v52 = vmul.f32 %v2179_v22, %v2177_v38  ;;  %v890_v53 = vpop.permute.xlu2 %889  ;;  %v612_v38 = vadd.f32 %v2646_v25, %v2705_v41  ;;  %v2757_v25 = vadd.f32 %v2133_v49, %v1099_v50  ;;  %v2759_v41 = vadd.f32 %v2133_v49, %v1096_v48 }
 0x842   :  { %910 = vmatpush.msra.mxu1 %v890_v53 }
 0x843   :  { %2022 = vmatmul.msk.f32.vlgmr.msra.gmra.mxu1 %vm347_vm7, %v862_v52  ;;  %v780_v39 = vadd.f32 %v2707_v43, %v612_v38  ;;  %v143_v43 = vld [vmem:[%s3069_s2 + $0x18] sm:$0xff] }
 0x844   :  { %2033 = vmatpush.xpose.msk.msrb.mxu1 %vm291_vm6, %v2757_v25 }
 0x848   :  { %2034 = vmatpush.xpose.msk.msrb.mxu1 %vm291_vm6, %v2759_v41 }
 0x87a   :  { %v960_v54 = vpop.xlane.xlu1 %959 }
 0x87b   :  { %v964_v55 = vmul.f32 %v960_v54, %v2488_v10 }
 0x87d   :  { %v966_v26 = vsub.f32 %v2717_v23, %v964_v55 }
 0x87f   :  { %v968_v56 = vmul.f32 %v966_v26, %v966_v26  ;;  %v1007_v34 = vmul.f32 %v1006_v17, %v966_v26 }
 0x881   :  { %v970_v0 = vsel %vm150_vm0, %v968_v56, 0.0  ;;  %v2788_v56 = vpack.i.bf16 %v2759_v41, %v2757_v25 }
 0x882   :  { %971 = vadd.xlane.f32.xlu1 %v970_v0 }
 0x8c0   :  { %v912_v57 = vpop.f32.mrf.mxu1 }
 0x8c1   :  { %2024 = vmatmul.msk.f32.gmra.mxu0 %vm291_vm6, %v912_v57 }
 0x8f5   :  { %v972_v12 = vpop.xlane.xlu1 %971 }
 0x8f6   :  { %v976_v14 = vmul.f32 0.015873017, %v972_v12 }
 0x8f8   :  { %2180 = vrsqrt.f32 %v976_v14  ;;  %vm985_vm8 = vcmp.eq.f32.partialorder %v976_v14, inf  ;;  %v988_v29 = vand.u32 2147483648, %v976_v14  ;;  %vm987_vm9 = vcmp.eq.f32.partialorder %v976_v14, 0.0 }
 0x8fe   :  { %v2181_v15 = vpop.eup %2180 }
 0x8ff   :  { %v979_v16 = vmul.f32 %v2181_v15, %v976_v14 }
 0x901   :  { %v980_v18 = vmul.f32 %v2181_v15, %v979_v16 }
 0x903   :  { %v981_v21 = vmul.f32 0.5, %v980_v18 }
 0x905   :  { %v982_v24 = vsub.f32 1.5, %v981_v21 }
 0x907   :  { %v983_v27 = vmul.f32 %v2181_v15, %v982_v24 }
 0x909   :  { %v984_v28 = vmul.f32 %v983_v27, %v976_v14 }
 0x90b   :  { %v986_v30 = vsel %vm985_vm8, %v976_v14, %v984_v28 }
 0x90c   :  { %v989_v32 = vsel %vm987_vm9, %v988_v29, %v986_v30 }
 0x90d   :  { %v1002_v33 = vadd.f32 1e-06, %v989_v32 }
 0x90f   :  { %2182 = vrcp.f32 %v1002_v33 }
 0x915   :  { %v2183_v35 = vpop.eup %2182 }
 0x916   :  { %v1009_v36 = vmul.f32 %v2183_v35, %v1007_v34 }
 0x918   :  { %v1012_v37 = vadd.f32 %v1011_v31, %v1009_v36 }
 0x91a   :  { %2027 = vmatmul.msk.f32.vlgmr.msra.gmra.mxu0 %vm150_vm0, %v1012_v37 }
 0x93e   :  { %v943_v40 = vpop.f32.mrf.mxu0 }
 0x93f   :  { %v947_v42 = vadd.f32 %v943_v40, %v780_v39 }
 0x941   :  { %v953_v44 = vadd.f32 %v2713_v46, %v947_v42  ;;  %v2776_v46 = vld [vmem:[%s3047_s10] ss:$0 sm:$0xff] }
 0x943   :  { %v2750_v45 = vadd.f32 %v953_v44, %v2484_v2  ;;  %v142_v2 = vld [vmem:[%s3069_s2 + $0x10] sm:$0xff] }
 0x944   :  { %2031 = vmatmul.msk.f32.gmra.mxu3 %vm150_vm0, %v142_v2 }
 0x945   :  { %v961_v47 = vsel %vm150_vm0, %v2750_v45, 0.0 }
 0x946   :  { %962 = vadd.xlane.f32.xlu1 %v961_v47 }
 0x94c   :  { %2032 = vmatmul.msk.f32.gmra.mxu3 %vm150_vm0, %v143_v43  ;;  %v2849_v43 = vld [vmem:[%s3041_s4 + $0x8] sm:$0xff] }
 0x997   :  { %v1049_v51 = vpop.f32.mrf.mxu0 }
 0x998   :  { %v2779_v22 = vadd.f32 %v2776_v46, %v1049_v51 }
 0x99a   :  { %2035 = vmatmul.msk.f32.vlgmr.msrb.gmra.mxu1 %vm291_vm6, %v2779_v22 }
 0x9b9   :  { %v963_v52 = vpop.xlane.xlu1 %962 }
 0x9ba   :  { %v965_v53 = vmul.f32 %v963_v52, %v2488_v10 }
 0x9bc   :  { %v967_v54 = vsub.f32 %v2750_v45, %v965_v53 }
 0x9be   :  { %v969_v55 = vmul.f32 %v967_v54, %v967_v54  ;;  %v1008_v24 = vmul.f32 %v1006_v17, %v967_v54 }
 0x9c0   :  { %v973_v26 = vsel %vm150_vm0, %v969_v55, 0.0 }
 0x9c1   :  { %974 = vadd.xlane.f32.xlu0 %v973_v26 }
 0x9c7   :  { %v1102_v0 = vpop.f32.mrf.mxu3 }
 0x9c8   :  { %v2792_v57 = vadd.f32 %v2133_v49, %v1102_v0 }
 0x9cf   :  { %v1105_v61 = vpop.f32.mrf.mxu3 }
 0x9d0   :  { %v2802_v63 = vadd.f32 %v2133_v49, %v1105_v61 }
 0x9d2   :  { %2036 = vmatpush.xpose.msk.msra.mxu1 %vm291_vm6, %v2802_v63  ;;  %v2813_v4 = vpack.i.bf16 %v2792_v57, %v2802_v63 }
 0x9d5   :  { %2093 = vrot.lane.b32.xlu0 %v2788_v56, %s2352_s13 }
 0x9d6   :  { %2037 = vmatpush.xpose.msk.msra.mxu1 %vm291_vm6, %v2792_v57 }
 0x9dd   :  { %1286 = vrot.lane.b32.xlu0 %v2792_v57, %s2354_s3 }
 0xa17   :  { %v1134_v58 = vpop.f32.mrf.mxu1 }
 0xa18   :  { %v1166_v60 = vmul.f32 0.25, %v1134_v58 }
 0xa1a   :  { %v1168_v62 = vadd.f32 %v1166_v60, %v2799_v59 }
 0xa1c   :  { %v1170_v20 = vsel %vm291_vm6, %v1168_v62, -inf }
 0xa1d   :  { %1171 = vmax.xlane.f32.xlu2 %v1170_v20 }
 0xa34   :  { %v975_v1 = vpop.xlane.xlu0 %974 }
 0xa35   :  { %v977_v3 = vmul.f32 0.015873017, %v975_v1  ;;  %1256 = vrot.lane.b32.xlu2 %v2757_v25, %s2354_s3 }
 0xa37   :  { %2184 = vrsqrt.f32 %v977_v3  ;;  %vm997_vm10 = vcmp.eq.f32.partialorder %v977_v3, inf  ;;  %v1000_v14 = vand.u32 2147483648, %v977_v3  ;;  %vm999_vm11 = vcmp.eq.f32.partialorder %v977_v3, 0.0 }
 0xa3d   :  { %v2185_v5 = vpop.eup %2184  ;;  %2098 = vrot.lane.b32.xlu2 %v2813_v4, %s2353_s25 }
 0xa3e   :  { %v991_v6 = vmul.f32 %v2185_v5, %v977_v3 }
 0xa40   :  { %v992_v7 = vmul.f32 %v2185_v5, %v991_v6 }
 0xa42   :  { %v993_v8 = vmul.f32 0.5, %v992_v7 }
 0xa44   :  { %v994_v9 = vsub.f32 1.5, %v993_v8 }
 0xa45   :  { %1464 = vrot.lane.b32.xlu2 %v2757_v25, %s2356_s29 }
 0xa46   :  { %v995_v11 = vmul.f32 %v2185_v5, %v994_v9 }
 0xa47   :  { %v2094_v19 = vpop.permute.xlu0 %2093 }
 0xa48   :  { %v2095_v12 = vunpack.i.l.bf16 %v2094_v19  ;;  %v996_v13 = vmul.f32 %v995_v11, %v977_v3  ;;  %v2096_v15 = vunpack.i.h.bf16 %v2094_v19 }
 0xa4a   :  { %1215 = vmatpush.msra.mxu2 %v2095_v12  ;;  %v998_v16 = vsel %vm997_vm10, %v977_v3, %v996_v13 }
 0xa4b   :  { %v1001_v18 = vsel %vm999_vm11, %v1000_v14, %v998_v16 }
 0xa4c   :  { %1216 = vmatpush.msra.mxu2 %v2096_v15  ;;  %v1003_v21 = vadd.f32 1e-06, %v1001_v18 }
 0xa4d   :  { %1460 = vrot.lane.b32.xlu2 %v2779_v22, %s2356_s29 }
 0xa4e   :  { %2186 = vrcp.f32 %v1003_v21 }
 0xa4f   :  { %v1287_v42 = vpop.permute.xlu0 %1286 }
 0xa54   :  { %v2187_v27 = vpop.eup %2186 }
 0xa55   :  { %v1010_v28 = vmul.f32 %v2187_v27, %v1008_v24 }
 0xa57   :  { %v1013_v29 = vadd.f32 %v1011_v31, %v1010_v28 }
 0xa59   :  { %2028 = vmatmul.msk.f32.gmra.mxu0 %vm150_vm0, %v1013_v29 }
 0xa90   :  { %v1172_v30 = vpop.xlane.xlu2 %1171 }
 0xa91   :  { %v1176_v32 = vsub.f32 %v1168_v62, %v1172_v30 }
 0xa93   :  { %v1178_v33 = vmul.f32 1.442695, %v1176_v32 }
 0xa95   :  { %2188 = vpow2.f32 %v1178_v33 }
 0xa98   :  { %v1257_v34 = vpop.permute.xlu2 %1256 }
 0xa99   :  { %2041 = vmatpush.xpose.msk.msrb.mxu1 %vm291_vm6, %v1257_v34 }
 0xa9b   :  { %v2189_v35 = vpop.eup %2188 }
 0xa9c   :  { %v1182_v36 = vsel %vm291_vm6, %v2189_v35, 0.0 }
 0xa9d   :  { %1183 = vadd.xlane.f32.xlu1 %v1182_v36 }
 0xaa0   :  { %v2099_v47 = vpop.permute.xlu2 %2098 }
 0xaa1   :  { %v2100_v48 = vunpack.i.l.bf16 %v2099_v47  ;;  %v2101_v50 = vunpack.i.h.bf16 %v2099_v47 }
 0xaa8   :  { %v1465_v54 = vpop.permute.xlu2 %1464 }
 0xab0   :  { %v1461_v55 = vpop.permute.xlu2 %1460 }
 0xab6   :  { %1288 = vrot.lane.b32.xlu1 %v2802_v63, %s2354_s3 }
 0xad6   :  { %v1052_v17 = vpop.f32.mrf.mxu0 }
 0xad7   :  { %v2831_v37 = vadd.f32 %v2776_v46, %v1052_v17 }
 0xad9   :  { %1284 = vrot.lane.b32.xlu0 %v2831_v37, %s2354_s3  ;;  %2038 = vmatmul.msk.f32.vlgmr.msra.gmra.mxu1 %vm291_vm6, %v2831_v37 }
 0xae1   :  { %1254 = vrot.lane.b32.xlu0 %v2759_v41, %s2354_s3 }
 0xae9   :  { %1252 = vrot.lane.b32.xlu0 %v2779_v22, %s2354_s3 }
 0xb10   :  { %v1184_v31 = vpop.xlane.xlu1 %1183 }
 0xb11   :  { %2190 = vrcp.f32 %v1184_v31 }
 0xb17   :  { %v2191_v38 = vpop.eup %2190 }
 0xb18   :  { %v1190_v39 = vmul.f32 %v2191_v38, %v2189_v35 }
 0xb1a   :  { %2039 = vmatmul.msk.f32.vlgmr.msra.gmra.mxu2 %vm291_vm6, %v1190_v39 }
 0xb28   :  { %v1289_v40 = vpop.permute.xlu1 %1288 }
 0xb29   :  { %2044 = vmatpush.xpose.msk.msrb.mxu2 %vm291_vm6, %v1289_v40 }
 0xb2d   :  { %2045 = vmatpush.xpose.msk.msrb.mxu2 %vm291_vm6, %v1287_v42 }
 0xb4b   :  { %v1285_v44 = vpop.permute.xlu0 %1284 }
 0xb4c   :  { %2046 = vmatmul.msk.f32.vlgmr.msrb.gmra.mxu2 %vm291_vm6, %v1285_v44 }
 0xb53   :  { %v1255_v49 = vpop.permute.xlu0 %1254 }
 0xb54   :  { %2042 = vmatpush.xpose.msk.msrb.mxu1 %vm291_vm6, %v1255_v49 }
 0xb56   :  { %v1163_v2 = vpop.f32.mrf.mxu1 }
 0xb57   :  { %v1167_v46 = vmul.f32 0.25, %v1163_v2 }
 0xb58   :  { %1394 = vmatpush.msra.mxu1 %v2100_v48 }
 0xb59   :  { %v1169_v51 = vadd.f32 %v1167_v46, %v2849_v43 }
 0xb5a   :  { %1395 = vmatpush.msra.mxu1 %v2101_v50 }
 0xb5b   :  { %v1253_v52 = vpop.permute.xlu0 %1252  ;;  %v1173_v53 = vsel %vm291_vm6, %v1169_v51, -inf }
 0xb5c   :  { %1174 = vmax.xlane.f32.xlu2 %v1173_v53  ;;  %2043 = vmatmul.msk.f32.vlgmr.msrb.gmra.mxu1 %vm291_vm6, %v1253_v52  ;;  %v1401_v53 = vld [vmem:[#allocation8 + $0x18] sm:$0xff] }
 0xb5d   :  { %2053 = vmatpush.xpose.msk.msrb.mxu1 %vm291_vm6, %v1465_v54  ;;  %1422 = vmatpush.msra.mxu2 %v1401_v53  ;;  %v1400_v54 = vld [vmem:[#allocation8 + $0x10] sm:$0xff] }
 0xb5f   :  { %1423 = vmatpush.msra.mxu2 %v1400_v54 }
 0xb74   :  { %1496 = vrot.lane.b32.xlu2 %v2802_v63, %s2356_s29 }
 0xb7c   :  { %1645 = vrot.lane.b32.xlu2 %v2757_v25, %s2358_s0 }
 0xb84   :  { %1641 = vrot.lane.b32.xlu2 %v2779_v22, %s2358_s0 }
 0xb8c   :  { %1675 = vrot.lane.b32.xlu2 %v2792_v57, %s2358_s0 }
 0xb9d   :  { %v2863_v26 = vpop.f32.mrf.mxu2 }
 0xbcf   :  { %v1175_v0 = vpop.xlane.xlu2 %1174  ;;  %v1313_v58 = vpop.f32.mrf.mxu2 }
 0xbd0   :  { %v1317_v60 = vmul.f32 0.25, %v1313_v58  ;;  %v1177_v1 = vsub.f32 %v1169_v51, %v1175_v0 }
 0xbd2   :  { %v1319_v61 = vadd.f32 %v1317_v60, %v2849_v43  ;;  %v1180_v5 = vmul.f32 1.442695, %v1177_v1 }
 0xbd4   :  { %v1323_v62 = vsel %vm291_vm6, %v1319_v61, -inf }
 0xbd5   :  { %1324 = vmax.xlane.f32.xlu1 %v1323_v62 }
 0xbd7   :  { %v1497_v20 = vpop.permute.xlu2 %1496 }
 0xbd8   :  { %2056 = vmatpush.xpose.msk.msra.mxu3 %vm291_vm6, %v1497_v20 }
 0xbd9   :  { %v1281_v9 = vpop.f32.mrf.mxu1 }
 0xbda   :  { %v1316_v11 = vmul.f32 0.25, %v1281_v9 }
 0xbdc   :  { %v1318_v13 = vadd.f32 %v1316_v11, %v2799_v59 }
 0xbde   :  { %v1320_v14 = vsel %vm291_vm6, %v1318_v13, -inf }
 0xbdf   :  { %v1646_v50 = vpop.permute.xlu2 %1645 }
 0xbe7   :  { %v1642_v52 = vpop.permute.xlu2 %1641 }
 0xbee   :  { %1462 = vrot.lane.b32.xlu1 %v2759_v41, %s2356_s29 }
 0xbf6   :  { %2103 = vrot.lane.b32.xlu1 %v2813_v4, %s2352_s13 }
 0xc48   :  { %v1325_v25 = vpop.xlane.xlu1 %1324 }
 0xc49   :  { %v1327_v22 = vsub.f32 %v1319_v61, %v1325_v25 }
 0xc4b   :  { %v1330_v3 = vmul.f32 1.442695, %v1327_v22 }
 0xc4d   :  { %2192 = vpow2.f32 %v1330_v3 }
 0xc4e   :  { %2194 = vpow2.f32 %v1180_v5 }
 0xc53   :  { %v2193_v6 = vpop.eup %2192 }
 0xc54   :  { %v1335_v7 = vsel %vm291_vm6, %v2193_v6, 0.0  ;;  %v2195_v8 = vpop.eup %2194 }
 0xc55   :  { %1336 = vadd.xlane.f32.xlu0 %v1335_v7  ;;  %v1185_v19 = vsel %vm291_vm6, %v2195_v8, 0.0 }
 0xc5d   :  { %1186 = vadd.xlane.f32.xlu0 %v1185_v19 }
 0xc60   :  { %v1463_v12 = vpop.permute.xlu1 %1462 }
 0xc61   :  { %2054 = vmatpush.xpose.msk.msrb.mxu1 %vm291_vm6, %v1463_v12 }
 0xc65   :  { %1321 = vmax.xlane.f32.xlu0 %v1320_v14 }
 0xc68   :  { %v2104_v15 = vpop.permute.xlu1 %2103 }
 0xc69   :  { %v2105_v16 = vunpack.i.l.bf16 %v2104_v15  ;;  %v2106_v18 = vunpack.i.h.bf16 %v2104_v15 }
 0xc6b   :  { %1244 = vmatpush.msrb.mxu0 %v2105_v16 }
 0xc6d   :  { %1245 = vmatpush.msrb.mxu0 %v2106_v18  ;;  %v1609_v18 = vld [vmem:[#allocation8 + $0x28] sm:$0xff] }
 0xcc8   :  { %v1337_v21 = vpop.xlane.xlu0 %1336 }
 0xcc9   :  { %2196 = vrcp.f32 %v1337_v21 }
 0xccf   :  { %v2197_v24 = vpop.eup %2196 }
 0xcd0   :  { %v1341_v27 = vmul.f32 %v2197_v24, %v2193_v6  ;;  %v1187_v28 = vpop.xlane.xlu0 %1186 }
 0xcd1   :  { %2198 = vrcp.f32 %v1187_v28 }
 0xcd2   :  { %2048 = vmatmul.msk.f32.vlgmr.msra.gmra.mxu1 %vm291_vm6, %v1341_v27 }
 0xcd7   :  { %v2199_v29 = vpop.eup %2198 }
 0xcd8   :  { %v1191_v30 = vmul.f32 %v2199_v29, %v2195_v8  ;;  %v1322_v32 = vpop.xlane.xlu0 %1321 }
 0xcd9   :  { %v1326_v33 = vsub.f32 %v1318_v13, %v1322_v32 }
 0xcda   :  { %2040 = vmatmul.msk.f32.vlgmr.msrb.gmra.mxu0 %vm291_vm6, %v1191_v30  ;;  %2055 = vmatmul.msk.f32.vlgmr.msrb.gmra.mxu1 %vm291_vm6, %v1461_v55 }
 0xcdb   :  { %v1328_v34 = vmul.f32 1.442695, %v1326_v33 }
 0xcdd   :  { %2200 = vpow2.f32 %v1328_v34 }
 0xce3   :  { %v2201_v35 = vpop.eup %2200 }
 0xce4   :  { %v1332_v36 = vsel %vm291_vm6, %v2201_v35, 0.0 }
 0xce5   :  { %1333 = vadd.xlane.f32.xlu0 %v1332_v36 }
 0xcf9   :  { %2108 = vrot.lane.b32.xlu0 %v2788_v56, %s2353_s25  ;;  %s2966_s25 = sld [smem:[#allocation2 + $0x5]] }
 0xd01   :  { %1494 = vrot.lane.b32.xlu0 %v2792_v57, %s2356_s29 }
 0xd09   :  { %1492 = vrot.lane.b32.xlu0 %v2831_v37, %s2356_s29 }
 0xd11   :  { %1643 = vrot.lane.b32.xlu0 %v2759_v41, %s2358_s0 }
 0xd19   :  { %1677 = vrot.lane.b32.xlu0 %v2802_v63, %s2358_s0  ;;  %v1251_v63 = vld [vmem:[#allocation8 + $0x8] sm:$0xff] }
 0xd21   :  { %1673 = vrot.lane.b32.xlu0 %v2831_v37, %s2358_s0  ;;  %v1250_v37 = vld [vmem:[#allocation8] sm:$0xff] }
 0xd4f   :  { %v1397_v17 = vpop.f32.mrf.mxu1 }
 0xd57   :  { %v1489_v31 = vpop.f32.mrf.mxu1  ;;  %v1247_v46 = vpop.f32.mrf.mxu0 }
 0xd58   :  { %v1524_v38 = vmul.f32 0.25, %v1489_v31  ;;  %v1334_v57 = vpop.xlane.xlu0 %1333 }
 0xd59   :  { %2202 = vrcp.f32 %v1334_v57 }
 0xd5a   :  { %v1526_v39 = vadd.f32 %v1524_v38, %v2799_v59  ;;  %v1608_v38 = vld [vmem:[#allocation8 + $0x20] sm:$0xff] }
 0xd5c   :  { %v1528_v40 = vsel %vm291_vm6, %v1526_v39, -inf }
 0xd5d   :  { %1529 = vmax.xlane.f32.xlu1 %v1528_v40 }
 0xd5f   :  { %v2203_v44 = vpop.eup %2202 }
 0xd60   :  { %v1340_v48 = vmul.f32 %v2203_v44, %v2201_v35 }
 0xd6b   :  { %v2109_v42 = vpop.permute.xlu0 %2108 }
 0xd6c   :  { %v2110_v47 = vunpack.i.l.bf16 %v2109_v42  ;;  %v2111_v41 = vunpack.i.h.bf16 %v2109_v42 }
 0xd6e   :  { %1365 = vmatpush.msra.mxu0 %v2110_v47 }
 0xd70   :  { %1366 = vmatpush.msra.mxu0 %v2111_v41 }
 0xd71   :  { %2047 = vmatmul.msk.f32.vlgmr.msra.gmra.mxu0 %vm291_vm6, %v1340_v48 }
 0xd72   :  { %1451 = vmatpush.msrb.mxu0 %v1251_v63 }
 0xd73   :  { %v1495_v49 = vpop.permute.xlu0 %1494 }
 0xd74   :  { %1452 = vmatpush.msrb.mxu0 %v1250_v37  ;;  %2057 = vmatpush.xpose.msk.msra.mxu3 %vm291_vm6, %v1495_v49 }
 0xd76   :  { %2063 = vmatpush.xpose.msk.msra.mxu0 %vm291_vm6, %v1646_v50 }
 0xd78   :  { %1630 = vmatpush.msrb.mxu3 %v1609_v18 }
 0xd79   :  { %2051 = vmatmul.msk.f32.vlgmr.msrb.gmra.mxu0 %vm291_vm6, %v2863_v26 }
 0xd7a   :  { %1631 = vmatpush.msrb.mxu3 %v1608_v38  ;;  %v1892_v38 = vld [vmem:[#allocation9 + $0x20] sm:$0xff] }
 0xd7b   :  { %v1493_v2 = vpop.permute.xlu0 %1492 }
 0xd7c   :  { %2058 = vmatmul.msk.f32.vlgmr.msra.gmra.mxu3 %vm291_vm6, %v1493_v2 }
 0xd81   :  { %2052 = vmatmul.msk.f32.gmra.mxu0 %vm291_vm6, %v1247_v46 }
 0xd83   :  { %v1644_v51 = vpop.permute.xlu0 %1643 }
 0xd84   :  { %2064 = vmatpush.xpose.msk.msra.mxu0 %vm291_vm6, %v1644_v51 }
 0xd89   :  { %2065 = vmatmul.msk.f32.vlgmr.msra.gmra.mxu0 %vm291_vm6, %v1642_v52 }
 0xd8b   :  { %v1678_v13 = vpop.permute.xlu0 %1677 }
 0xd93   :  { %v1674_v16 = vpop.permute.xlu0 %1673 }
 0xdd0   :  { %v1530_v55 = vpop.xlane.xlu1 %1529 }
 0xdd1   :  { %v1534_v0 = vsub.f32 %v1526_v39, %v1530_v55 }
 0xdd3   :  { %v1536_v58 = vmul.f32 1.442695, %v1534_v0 }
 0xdd5   :  { %2204 = vpow2.f32 %v1536_v58  ;;  %v1790_v58 = vld [vmem:[#allocation8 + $0x38] sm:$0xff] }
 0xddb   :  { %v2205_v26 = vpop.eup %2204 }
 0xddc   :  { %v1540_v60 = vsel %vm291_vm6, %v2205_v26, 0.0 }
 0xddd   :  { %1541 = vadd.xlane.f32.xlu1 %v1540_v60  ;;  %v1789_v60 = vld [vmem:[#allocation8 + $0x30] sm:$0xff] }
 0xdee   :  { %v1368_v61 = vpop.f32.mrf.mxu0 }
 0xdef   :  { %2049 = vmatmul.msk.f32.vlgmr.msra.gmra.mxu2 %vm291_vm6, %v1368_v61 }
 0xdf6   :  { %2113 = vrot.lane.b32.xlu1 %v2788_v56, %s2355_s28  ;;  %v2908_v62 = vpop.f32.mrf.mxu0 }
 0xdf7   :  { %2050 = vmatmul.msk.f32.gmra.mxu2 %vm291_vm6, %v1397_v17 }
 0xdfe   :  { %v2911_v20 = vpop.f32.mrf.mxu0 }
 0xdff   :  { %v1521_v25 = vpop.f32.mrf.mxu3 }
 0xe00   :  { %v1525_v22 = vmul.f32 0.25, %v1521_v25 }
 0xe02   :  { %v1527_v1 = vadd.f32 %v1525_v22, %v2849_v43 }
 0xe04   :  { %v1531_v3 = vsel %vm291_vm6, %v1527_v1, -inf }
 0xe05   :  { %1532 = vmax.xlane.f32.xlu2 %v1531_v3 }
 0xe06   :  { %v1670_v5 = vpop.f32.mrf.mxu0 }
 0xe07   :  { %v1705_v6 = vmul.f32 0.25, %v1670_v5 }
 0xe09   :  { %v1707_v7 = vadd.f32 %v1705_v6, %v2799_v59  ;;  %v1676_v59 = vpop.permute.xlu2 %1675 }
 0xe0b   :  { %v1709_v8 = vsel %vm291_vm6, %v1707_v7, -inf }
 0xe0c   :  { %1710 = vmax.xlane.f32.xlu0 %v1709_v8 }
 0xe20   :  { %2118 = vrot.lane.b32.xlu0 %v2813_v4, %s2355_s28 }
 0xe50   :  { %v1542_v9 = vpop.xlane.xlu1 %1541 }
 0xe51   :  { %2206 = vrcp.f32 %v1542_v9  ;;  %v2135_v9 = vld [vmem:[%s3051_s14] ss:$0 sm:$0xff]  ;;  %s2964_s14 = sld [smem:[#allocation2 + $0x4]] }
 0xe57   :  { %v2207_v19 = vpop.eup %2206 }
 0xe58   :  { %v1548_v15 = vmul.f32 %v2207_v19, %v2205_v26 }
 0xe68   :  { %v2114_v11 = vpop.permute.xlu1 %2113 }
 0xe69   :  { %v2115_v12 = vunpack.i.l.bf16 %v2114_v11  ;;  %v2116_v14 = vunpack.i.h.bf16 %v2114_v11 }
 0xe6b   :  { %1573 = vmatpush.msra.mxu1 %v2115_v12 }
 0xe6d   :  { %1574 = vmatpush.msra.mxu1 %v2116_v14 }
 0xe6e   :  { %2059 = vmatmul.msk.f32.vlgmr.msra.gmra.mxu1 %vm291_vm6, %v1548_v15 }
 0xe6f   :  { %2066 = vmatpush.xpose.msk.msrb.mxu1 %vm291_vm6, %v1678_v13 }
 0xe72   :  { %v1425_v50 = vpop.f32.mrf.mxu2 }
 0xe73   :  { %2067 = vmatpush.xpose.msk.msrb.mxu1 %vm291_vm6, %v1676_v59 }
 0xe76   :  { %2068 = vmatmul.msk.f32.vlgmr.msrb.gmra.mxu1 %vm291_vm6, %v1674_v16 }
 0xe77   :  { %1811 = vmatpush.msra.mxu1 %v1790_v58  ;;  %v1946_v58 = vld [vmem:[%s3054_s17 + $0x78] sm:$0xff] }
 0xe78   :  { %v1533_v21 = vpop.xlane.xlu2 %1532 }
 0xe79   :  { %v1535_v24 = vsub.f32 %v1527_v1, %v1533_v21  ;;  %1812 = vmatpush.msra.mxu1 %v1789_v60 }
 0xe7a   :  { %v1428_v51 = vpop.f32.mrf.mxu2 }
 0xe7b   :  { %v1538_v27 = vmul.f32 1.442695, %v1535_v24  ;;  %v1458_v59 = vadd.f32 %v2911_v20, %v1428_v51 }
 0xe7d   :  { %2208 = vpow2.f32 %v1538_v27 }
 0xe7f   :  { %v1711_v28 = vpop.xlane.xlu0 %1710 }
 0xe80   :  { %v1715_v29 = vsub.f32 %v1707_v7, %v1711_v28  ;;  %v1455_v7 = vadd.f32 %v2908_v62, %v1425_v50 }
 0xe82   :  { %v1717_v30 = vmul.f32 1.442695, %v1715_v29 }
 0xe83   :  { %v2209_v32 = vpop.eup %2208 }
 0xe84   :  { %2210 = vpow2.f32 %v1717_v30  ;;  %v1543_v33 = vsel %vm291_vm6, %v2209_v32, 0.0 }
 0xe85   :  { %1544 = vadd.xlane.f32.xlu2 %v1543_v33 }
 0xe8a   :  { %v2211_v34 = vpop.eup %2210 }
 0xe8b   :  { %v1721_v35 = vsel %vm291_vm6, %v2211_v34, 0.0 }
 0xe8d   :  { %1722 = vadd.xlane.f32.xlu2 %v1721_v35  ;;  %v1895_v35 = vld [vmem:[#allocation9 + $0x38] sm:$0xff] }
 0xe8e   :  { %1914 = vmatpush.msra.mxu3 %v1895_v35 }
 0xe92   :  { %v2119_v36 = vpop.permute.xlu0 %2118 }
 0xe93   :  { %v2120_v17 = vunpack.i.l.bf16 %v2119_v36  ;;  %v2121_v31 = vunpack.i.h.bf16 %v2119_v36  ;;  %v1894_v36 = vld [vmem:[#allocation9 + $0x30] sm:$0xff] }
 0xe94   :  { %1915 = vmatpush.msra.mxu3 %v1894_v36 }
 0xe95   :  { %1602 = vmatpush.msrb.mxu2 %v2120_v17 }
 0xe97   :  { %1603 = vmatpush.msrb.mxu2 %v2121_v31  ;;  %v1893_v31 = vld [vmem:[#allocation9 + $0x28] sm:$0xff] }
 0xe98   :  { %1916 = vmatpush.msra.mxu3 %v1893_v31 }
 0xe9a   :  { %1917 = vmatpush.msra.mxu3 %v1892_v38 }
 0xeeb   :  { %v1576_v39 = vpop.f32.mrf.mxu1 }
 0xeec   :  { %2061 = vmatmul.msk.f32.vlgmr.msrb.gmra.mxu3 %vm291_vm6, %v1576_v39  ;;  %v1891_v39 = vld [vmem:[#allocation9 + $0x18] sm:$0xff] }
 0xeed   :  { %1918 = vmatpush.msra.mxu3 %v1891_v39 }
 0xef3   :  { %v1702_v40 = vpop.f32.mrf.mxu1 }
 0xef4   :  { %v1706_v57 = vmul.f32 0.25, %v1702_v40  ;;  %v1890_v40 = vld [vmem:[#allocation9 + $0x10] sm:$0xff] }
 0xef5   :  { %1919 = vmatpush.msra.mxu3 %v1890_v40  ;;  %v2137_v40 = vld [vmem:[%s3055_s18] ss:$0 sm:$0xff] }
 0xef6   :  { %v1708_v42 = vadd.f32 %v1706_v57, %v2849_v43 }
 0xef8   :  { %v1545_v44 = vpop.xlane.xlu2 %1544  ;;  %v1712_v47 = vsel %vm291_vm6, %v1708_v42, -inf }
 0xef9   :  { %2212 = vrcp.f32 %v1545_v44  ;;  %1713 = vmax.xlane.f32.xlu1 %v1712_v47 }
 0xeff   :  { %v2213_v41 = vpop.eup %2212 }
 0xf00   :  { %v1549_v48 = vmul.f32 %v2213_v41, %v2209_v32  ;;  %v1723_v46 = vpop.xlane.xlu2 %1722 }
 0xf02   :  { %2060 = vmatmul.msk.f32.vlgmr.msrb.gmra.mxu2 %vm291_vm6, %v1549_v48 }
 0xf12   :  { %2123 = vrot.lane.b32.xlu1 %v2788_v56, %s2357_s11 }
 0xf6c   :  { %v1714_v63 = vpop.xlane.xlu1 %1713 }
 0xf6d   :  { %v1716_v37 = vsub.f32 %v1708_v42, %v1714_v63  ;;  %v1888_v42 = vld [vmem:[#allocation9] sm:$0xff] }
 0xf6f   :  { %v1719_v49 = vmul.f32 1.442695, %v1716_v37 }
 0xf71   :  { %2214 = vpow2.f32 %v1719_v49 }
 0xf72   :  { %2216 = vrcp.f32 %v1723_v46 }
 0xf77   :  { %v2215_v2 = vpop.eup %2214 }
 0xf78   :  { %v1724_v43 = vsel %vm291_vm6, %v2215_v2, 0.0  ;;  %v2217_v53 = vpop.eup %2216 }
 0xf79   :  { %1725 = vadd.xlane.f32.xlu2 %v1724_v43  ;;  %v1729_v56 = vmul.f32 %v2217_v53, %v2211_v34 }
 0xf84   :  { %v2124_v52 = vpop.permute.xlu1 %2123 }
 0xf85   :  { %v2125_v54 = vunpack.i.l.bf16 %v2124_v52  ;;  %v1605_v55 = vpop.f32.mrf.mxu2  ;;  %v2126_v0 = vunpack.i.h.bf16 %v2124_v52  ;;  %v1880_v52 = vstv %s2964_s14 }
 0xf86   :  { %2062 = vmatmul.msk.f32.gmra.mxu3 %vm291_vm6, %v1605_v55  ;;  %v1885_v55 = vstv %s2966_s25 }
 0xf87   :  { %1754 = vmatpush.msra.mxu2 %v2125_v54 }
 0xf89   :  { %1755 = vmatpush.msra.mxu2 %v2126_v0 }
 0xf8a   :  { %2069 = vmatmul.msk.f32.vlgmr.msra.gmra.mxu2 %vm291_vm6, %v1729_v56 }
 0xf8b   :  { %1947 = vmatpush.msrb.mxu2 %v1946_v58 }
 0xf91   :  { %2128 = vrot.lane.b32.xlu2 %v2813_v4, %s2357_s11  ;;  %v1633_v4 = vpop.f32.mrf.mxu3 }
 0xf92   :  { %v1639_v8 = vadd.f32 %v1633_v4, %v1455_v7  ;;  %v1940_v7 = vld [vmem:[%s3054_s17 + $0x48] sm:$0xff] }
 0xfec   :  { %v1726_v26 = vpop.xlane.xlu2 %1725 }
 0xfed   :  { %2218 = vrcp.f32 %v1726_v26 }
 0xff3   :  { %v2219_v25 = vpop.eup %2218 }
 0xff4   :  { %v2129_v61 = vpop.permute.xlu2 %2128  ;;  %v1730_v3 = vmul.f32 %v2219_v25, %v2215_v2  ;;  %v1944_v25 = vld [vmem:[%s3054_s17 + $0x68] sm:$0xff] }
 0xff5   :  { %v2130_v22 = vunpack.i.l.bf16 %v2129_v61  ;;  %v2131_v1 = vunpack.i.h.bf16 %v2129_v61  ;;  %v1945_v61 = vld [vmem:[%s3054_s17 + $0x70] sm:$0xff] }
 0xff6   :  { %1948 = vmatpush.msrb.mxu2 %v1945_v61 }
 0xff7   :  { %1783 = vmatpush.msrb.mxu0 %v2130_v22  ;;  %v1943_v22 = vld [vmem:[%s3054_s17 + $0x60] sm:$0xff] }
 0xff8   :  { %1949 = vmatpush.msrb.mxu2 %v1944_v25 }
 0xff9   :  { %1784 = vmatpush.msrb.mxu0 %v2131_v1 }
 0xffa   :  { %2070 = vmatmul.msk.f32.vlgmr.msrb.gmra.mxu0 %vm291_vm6, %v1730_v3  ;;  %v1942_v3 = vld [vmem:[%s3054_s17 + $0x58] sm:$0xff]  ;;  %1950 = vmatpush.msrb.mxu2 %v1943_v22 }
 0xffc   :  { %1951 = vmatpush.msrb.mxu2 %v1942_v3 }
0x1009   :  { %v1636_v15 = vpop.f32.mrf.mxu3 }
0x100a   :  { %v1640_v16 = vadd.f32 %v1636_v15, %v1458_v59 }
0x100d   :  { %v1757_v5 = vpop.f32.mrf.mxu2 }
0x100e   :  { %2071 = vmatmul.msk.f32.vlgmr.msra.gmra.mxu1 %vm291_vm6, %v1757_v5 }
0x1077   :  { %v1786_v6 = vpop.f32.mrf.mxu0 }
0x1078   :  { %2072 = vmatmul.msk.f32.gmra.mxu1 %vm291_vm6, %v1786_v6  ;;  %v1941_v6 = vld [vmem:[%s3054_s17 + $0x50] sm:$0xff] }
0x1079   :  { %1952 = vmatpush.msrb.mxu2 %v1941_v6 }
0x107b   :  { %1953 = vmatpush.msrb.mxu2 %v1940_v7 }
0x108b   :  { %v1814_v11 = vpop.f32.mrf.mxu1 }
0x108c   :  { %v1820_v19 = vadd.f32 %v1814_v11, %v1639_v8 }
0x108e   :  { %v1826_v12 = vadd.f32 %v2135_v9, %v1820_v19  ;;  %v1938_v19 = vld [vmem:[%s3054_s17 + $0x38] sm:$0xff] }
0x1090   :  { %v2944_v13 = vadd.f32 %v1826_v12, %v2717_v23 }
0x1092   :  { %v1832_v14 = vsel %vm150_vm0, %v2944_v13, 0.0 }
0x1093   :  { %1833 = vadd.xlane.f32.xlu0 %v1832_v14  ;;  %v1937_v14 = vld [vmem:[%s3054_s17 + $0x30] sm:$0xff] }
0x10f5   :  { %v1817_v62 = vpop.f32.mrf.mxu1 }
0x10f6   :  { %v1821_v18 = vadd.f32 %v1817_v62, %v1640_v16  ;;  %v1936_v16 = vld [vmem:[%s3054_s17 + $0x28] sm:$0xff] }
0x10f8   :  { %v1827_v21 = vadd.f32 %v2135_v9, %v1821_v18  ;;  %v1939_v9 = vld [vmem:[%s3054_s17 + $0x40] sm:$0xff] }
0x10f9   :  { %1954 = vmatpush.msrb.mxu2 %v1939_v9 }
0x10fa   :  { %v2950_v24 = vadd.f32 %v1827_v21, %v2750_v45  ;;  %v1935_v21 = vld [vmem:[%s3054_s17 + $0x20] sm:$0xff] }
0x10fb   :  { %1955 = vmatpush.msrb.mxu2 %v1938_v19 }
0x10fc   :  { %v1835_v27 = vsel %vm150_vm0, %v2950_v24, 0.0 }
0x10fd   :  { %1836 = vadd.xlane.f32.xlu1 %v1835_v27  ;;  %1956 = vmatpush.msrb.mxu2 %v1937_v14 }
0x10ff   :  { %1957 = vmatpush.msrb.mxu2 %v1936_v16 }
0x1101   :  { %1958 = vmatpush.msrb.mxu2 %v1935_v21 }
0x1106   :  { %v1834_v23 = vpop.xlane.xlu0 %1833 }
0x1107   :  { %v1838_v28 = vmul.f32 %v1834_v23, %v2488_v10  ;;  %v1934_v23 = vld [vmem:[%s3054_s17 + $0x18] sm:$0xff] }
0x1108   :  { %1959 = vmatpush.msrb.mxu2 %v1934_v23 }
0x1109   :  { %v1840_v29 = vsub.f32 %v2944_v13, %v1838_v28  ;;  %v1933_v28 = vld [vmem:[%s3054_s17 + $0x10] sm:$0xff] }
0x110a   :  { %1960 = vmatpush.msrb.mxu2 %v1933_v28 }
0x110b   :  { %v1842_v30 = vmul.f32 %v1840_v29, %v1840_v29  ;;  %v1881_v53 = vmul.f32 %v1880_v52, %v1840_v29 }
0x110d   :  { %v1844_v32 = vsel %vm150_vm0, %v1842_v30, 0.0 }
0x110e   :  { %1845 = vadd.xlane.f32.xlu2 %v1844_v32  ;;  %v1932_v32 = vld [vmem:[%s3054_s17 + $0x8] sm:$0xff] }
0x110f   :  { %1961 = vmatpush.msrb.mxu2 %v1932_v32 }
0x1170   :  { %v1837_v20 = vpop.xlane.xlu1 %1836 }
0x1171   :  { %v1839_v33 = vmul.f32 %v1837_v20, %v2488_v10  ;;  %v1889_v10 = vld [vmem:[#allocation9 + $0x8] sm:$0xff] }
0x1172   :  { %1920 = vmatpush.msra.mxu3 %v1889_v10 }
0x1173   :  { %v2959_v34 = vsub.f32 %v2950_v24, %v1839_v33  ;;  %v1931_v33 = vld [vmem:[%s3054_s17] sm:$0xff] }
0x1174   :  { %1921 = vmatpush.msra.mxu3 %v1888_v42  ;;  %1962 = vmatpush.msrb.mxu2 %v1931_v33 }
0x1175   :  { %v1843_v45 = vmul.f32 %v2959_v34, %v2959_v34  ;;  %v1882_v29 = vmul.f32 %v1880_v52, %v2959_v34  ;;  %v2136_v34 = vld [vmem:[%s3053_s16] ss:$0 sm:$0xff]  ;;  %s3070_s16 = sld [smem:[#allocation19_spill]] }
0x1177   :  { %v1847_v17 = vsel %vm150_vm0, %v1843_v45, 0.0 }
0x1178   :  { %1848 = vadd.xlane.f32.xlu0 %v1847_v17 }
0x1181   :  { %v1846_v57 = vpop.xlane.xlu2 %1845 }
0x1182   :  { %v1850_v44 = vmul.f32 0.015873017, %v1846_v57 }
0x1184   :  { %2220 = vrsqrt.f32 %v1850_v44  ;;  %vm1859_vm12 = vcmp.eq.f32.partialorder %v1850_v44, inf  ;;  %v1862_v2 = vand.u32 2147483648, %v1850_v44  ;;  %vm1861_vm13 = vcmp.eq.f32.partialorder %v1850_v44, 0.0 }
0x118a   :  { %v2221_v47 = vpop.eup %2220 }
0x118b   :  { %v1853_v41 = vmul.f32 %v2221_v47, %v1850_v44 }
0x118d   :  { %v1854_v48 = vmul.f32 %v2221_v47, %v1853_v41 }
0x118f   :  { %v1855_v63 = vmul.f32 0.5, %v1854_v48 }
0x1191   :  { %v1856_v37 = vsub.f32 1.5, %v1855_v63 }
0x1193   :  { %v1857_v49 = vmul.f32 %v2221_v47, %v1856_v37 }
0x1195   :  { %v1858_v50 = vmul.f32 %v1857_v49, %v1850_v44 }
0x1197   :  { %v1860_v43 = vsel %vm1859_vm12, %v1850_v44, %v1858_v50 }
0x1198   :  { %v1863_v46 = vsel %vm1861_vm13, %v1862_v2, %v1860_v43 }
0x1199   :  { %v1876_v51 = vadd.f32 1e-06, %v1863_v46 }
0x119b   :  { %2222 = vrcp.f32 %v1876_v51 }
0x11a1   :  { %v2223_v54 = vpop.eup %2222 }
0x11a2   :  { %v1883_v0 = vmul.f32 %v2223_v54, %v1881_v53 }
0x11a4   :  { %v1886_v56 = vadd.f32 %v1885_v55, %v1883_v0 }
0x11a6   :  { %2075 = vmatmul.msk.f32.vlgmr.msra.gmra.mxu3 %vm150_vm0, %v1886_v56 }
0x11eb   :  { %v1849_v26 = vpop.xlane.xlu0 %1848 }
0x11ec   :  { %v1851_v60 = vmul.f32 0.015873017, %v1849_v26 }
0x11ee   :  { %2224 = vrsqrt.f32 %v1851_v60  ;;  %vm1871_vm14 = vcmp.eq.f32.partialorder %v1851_v60, inf  ;;  %v1874_v59 = vand.u32 2147483648, %v1851_v60  ;;  %vm1873_vm15 = vcmp.eq.f32.partialorder %v1851_v60, 0.0 }
0x11f4   :  { %v2225_v1 = vpop.eup %2224 }
0x11f5   :  { %v1865_v5 = vmul.f32 %v2225_v1, %v1851_v60 }
0x11f7   :  { %v1866_v4 = vmul.f32 %v2225_v1, %v1865_v5 }
0x11f9   :  { %v1867_v8 = vmul.f32 0.5, %v1866_v4 }
0x11fb   :  { %v1868_v11 = vsub.f32 1.5, %v1867_v8 }
0x11fd   :  { %v1869_v12 = vmul.f32 %v2225_v1, %v1868_v11 }
0x11ff   :  { %v1870_v15 = vmul.f32 %v1869_v12, %v1851_v60 }
0x1201   :  { %v1872_v62 = vsel %vm1871_vm14, %v1851_v60, %v1870_v15 }
0x1202   :  { %v1875_v18 = vsel %vm1873_vm15, %v1874_v59, %v1872_v62 }
0x1203   :  { %v1877_v27 = vadd.f32 1e-06, %v1875_v18 }
0x1205   :  { %2226 = vrcp.f32 %v1877_v27 }
0x120b   :  { %v2227_v30 = vpop.eup %2226 }
0x120c   :  { %v1884_v20 = vmul.f32 %v2227_v30, %v1882_v29 }
0x120e   :  { %v1887_v45 = vadd.f32 %v1885_v55, %v1884_v20 }
0x1210   :  { %2076 = vmatmul.msk.f32.gmra.mxu3 %vm150_vm0, %v1887_v45 }
0x1229   :  { %v1923_v35 = vpop.f32.mrf.mxu3 }
0x122a   :  { %v1924_v36 = vadd.f32 %v2136_v34, %v1923_v35 }
0x122c   :  { %v1929_v17 = vmax.f32 %v1924_v36, 0.0 }
0x122e   :  { %1963 = vmatmul.f32.vlgmr.msrb.gmra.mxu2 %v1929_v17 }
0x1293   :  { %v1926_v31 = vpop.f32.mrf.mxu3 }
0x1294   :  { %v1927_v38 = vadd.f32 %v2136_v34, %v1926_v31 }
0x1296   :  { %v1930_v39 = vmax.f32 %v1927_v38, 0.0 }
0x1298   :  { %1966 = vmatmul.f32.gmra.mxu2 %v1930_v39 }
0x12b1   :  { %v1964_v10 = vpop.f32.mrf.mxu2 }
0x12b2   :  { %v1970_v57 = vadd.f32 %v1964_v10, %v2944_v13 }
0x12b4   :  { %v1976_v42 = vadd.f32 %v2137_v40, %v1970_v57 }
0x12b6   :  { %1978 = vst.msk [vmem:[%s3070_s16] sm:$0xff] %vm150_vm0, %v1976_v42 }
0x131b   :  { %v1967_v44 = vpop.f32.mrf.mxu2 }
0x131c   :  { %v1971_v47 = vadd.f32 %v1967_v44, %v2950_v24 }
0x131e   :  { %v1977_v41 = vadd.f32 %v2137_v40, %v1971_v47 }
0x1320   :  { %1979 = vst.msk [vmem:[%s3070_s16 + $0x8] sm:$0xff] %vm150_vm0, %v1977_v41 }
0x1321   :  { %1984 = vsyncpa [#allocation3], 1 }
0x1322   :  { %1985 = vsyncpa [#allocation7], 1 }
0x1323   :  { %1986 = vsyncpa [#allocation10], 1 }
0x1324   :  { %1987 = vsyncpa [#allocation4], 1 }

</bundles_post_ra>
